<compile_context>
chip_gen: v7x
topology: tpu7x:2x2x1
jax: 0.10.0
libtpu: 0.0.40
codegen_flags: <defaults>
</compile_context>

<pallas_src>
import functools

import jax
import jax.numpy as jnp
import numpy as np
from jax.experimental import pallas as pl
from jax.experimental.pallas import tpu as pltpu

K = 7
PAD = (K - 1) // 2  # 3


def spatial_gate_kernel(w_ref, b_ref, x_ref, o_ref, maxbuf_ref, sumbuf_ref,
                        *shift_refs, H, W, NB):
    HW = H * W
    base = PAD * W + PAD                 # flat offset of pixel (0,0) in the padded buffer
    shift_len = HW + (K - 1) * W         # length of a dw-shifted slab
    smax_refs = shift_refs[:K]           # 7 pre-masked dw-shifted max-pool slabs
    ssum_refs = shift_refs[K:]           # 7 pre-masked dw-shifted sum-pool slabs

    # Zero only the vertical-padding borders (the interior is overwritten below).
    zb = jnp.zeros((NB, base), jnp.float32)
    maxbuf_ref[:, 0:base] = zb
    maxbuf_ref[:, base + HW:base + HW + base] = zb
    sumbuf_ref[:, 0:base] = zb
    sumbuf_ref[:, base + HW:base + HW + base] = zb

    # ChannelPool: per-image max & sum over channels from one loaded (C, HW) tile,
    # staged into rows of the padded flat buffers (rows = images -> dense conv).
    for b in range(NB):
        xb = x_ref[b].astype(jnp.float32)                                   # (C, HW)
        maxbuf_ref[b:b + 1, base:base + HW] = jnp.max(xb, axis=0, keepdims=True)
        sumbuf_ref[b:b + 1, base:base + HW] = jnp.sum(xb, axis=0, keepdims=True)

    # Hoisted horizontal shift + border masks: 7 pre-masked shifted copies per buffer.
    col = jax.lax.broadcasted_iota(jnp.int32, (1, shift_len), 1) % W        # hoisted
    for dw in range(K):
        m = maxbuf_ref[:, dw:dw + shift_len]
        s = sumbuf_ref[:, dw:dw + shift_len]
        if dw < PAD:
            keep = col >= (PAD - dw)
            m = jnp.where(keep, m, 0.0)
            s = jnp.where(keep, s, 0.0)
        elif dw > PAD:
            keep = col < (W + PAD - dw)
            m = jnp.where(keep, m, 0.0)
            s = jnp.where(keep, s, 0.0)
        smax_refs[dw][...] = m
        ssum_refs[dw][...] = s

    # 7x7 "same" conv, batched over all NB images at once.  Weights hoisted.
    wmax = [w_ref[i] for i in range(K * K)]
    wsum = [w_ref[K * K + i] for i in range(K * K)]
    acc = None
    for dw in range(K):
        mref = smax_refs[dw]
        sref = ssum_refs[dw]
        for dh in range(K):
            i = dh * K + dw
            lo = dh * W
            term = wmax[i] * mref[:, lo:lo + HW] + wsum[i] * sref[:, lo:lo + HW]
            acc = term if acc is None else acc + term

    scale = jax.nn.sigmoid(acc + b_ref[0])                                   # (NB, HW)

    # Gating multiply: re-read x from the resident VMEM block (cheap vld, keeps
    # vreg pressure low instead of holding x live across the 49-tap conv).
    for b in range(NB):
        o_ref[b] = (x_ref[b].astype(jnp.float32) * scale[b:b + 1, :]).astype(o_ref.dtype)


def spatial_gate(x, conv_w, bn_gamma, bn_beta, bn_mean, bn_var, eps=1e-5):
    """x: (N, C, H, W). conv_w: (1, 2, 7, 7) OIHW, channels [max, avg]. BN params (1,)."""
    N, C, H, W = x.shape
    HW = H * W
    base = PAD * W + PAD
    pad_len = HW + 2 * base
    shift_len = HW + (K - 1) * W

    # Fold BatchNorm2d (inference / running-stats mode) into the conv:
    #   bn(conv(z)) = conv(z)*s + b,  s = gamma/sqrt(var+eps),  b = beta - mean*s,
    # and fold the 1/C of the mean pool into the avg-channel weights (kernel uses sum).
    # TODO(synk): PyTorch training-mode BN uses per-batch statistics; this kernel
    # implements the standard inference-mode (running-stats) BN.
    s = bn_gamma.astype(jnp.float32) / jnp.sqrt(bn_var.astype(jnp.float32) + eps)  # (1,)
    w2 = conv_w[0].astype(jnp.float32) * s[0]                                # (2, 7, 7)
    w2 = w2 * jnp.array([1.0, 1.0 / C], jnp.float32)[:, None, None]
    w_eff = w2.reshape(-1)                                                   # (98,)
    b_eff = bn_beta.astype(jnp.float32) - bn_mean.astype(jnp.float32) * s    # (1,)

    x_flat = x.reshape(N, C, HW)                                             # lane-dense view

    # --- block sizing (images per grid step) ---
    itemsize = x.dtype.itemsize
    img_bytes = C * HW * itemsize
    # Per-image VMEM estimate: double-buffered in+out blocks, padded pool rows,
    # and the 14 dw-shifted pre-masked slabs.
    per_img_vmem = 4 * img_bytes + 2 * pad_len * 4 + 2 * K * shift_len * 4
    nb = min(N, 64,                                                # bound unrolled code size
             max(1, (2 << 20) // max(img_bytes, 1)),               # ~2 MiB of x per step
             max(1, (24 << 20) // max(per_img_vmem, 1)))           # v7x-safe VMEM budget
    if N >= 2:
        nb = min(nb, N // 2)                                       # keep grid >= 2 (megacore)
    nb = max(int(nb), 1)
    if nb >= 8:
        nb -= nb % 8                                               # full-sublane pooled slabs
    while N % nb:
        nb -= 1

    # TODO(synk): a single image whose footprint exceeds the VMEM budget would need
    # channel tiling; not needed for typical SpatialGate feature-map shapes.
    vmem_limit = int(min(max(nb * per_img_vmem + (8 << 20), 32 << 20), 64 << 20))

    kernel = functools.partial(spatial_gate_kernel, H=H, W=W, NB=nb)

    out_flat = pl.pallas_call(
        kernel,
        out_shape=jax.ShapeDtypeStruct((N, C, HW), x.dtype),
        grid_spec=pltpu.PrefetchScalarGridSpec(
            num_scalar_prefetch=2,                                 # w_eff, b_eff -> SMEM
            grid=(N // nb,),
            in_specs=[pl.BlockSpec((nb, C, HW), lambda n, *_: (n, 0, 0))],
            out_specs=pl.BlockSpec((nb, C, HW), lambda n, *_: (n, 0, 0)),
            scratch_shapes=(
                [pltpu.VMEM((nb, pad_len), jnp.float32),           # padded flat max pool
                 pltpu.VMEM((nb, pad_len), jnp.float32)]           # padded flat sum pool
                + [pltpu.VMEM((nb, shift_len), jnp.float32)] * (2 * K)  # dw-shifted slabs
            ),
        ),
        compiler_params=pltpu.CompilerParams(
            dimension_semantics=("parallel",),                     # batch blocks independent
            vmem_limit_bytes=vmem_limit,
        ),
    )(w_eff, b_eff, x_flat)

    return out_flat.reshape(N, C, H, W)


def spatial_gate_reference(x, conv_w, bn_gamma, bn_beta, bn_mean, bn_var, eps=1e-5):
    maxp = jnp.max(x, axis=1, keepdims=True)
    avgp = jnp.mean(x, axis=1, keepdims=True)
    comp = jnp.concatenate([maxp, avgp], axis=1)                   # (N, 2, H, W)
    y = jax.lax.conv_general_dilated(
        comp, conv_w, window_strides=(1, 1),
        padding=[(PAD, PAD), (PAD, PAD)],
        dimension_numbers=("NCHW", "OIHW", "NCHW"))
    g = bn_gamma.reshape(1, -1, 1, 1)
    b = bn_beta.reshape(1, -1, 1, 1)
    m = bn_mean.reshape(1, -1, 1, 1)
    v = bn_var.reshape(1, -1, 1, 1)
    y = g * (y - m) / jnp.sqrt(v + eps) + b
    return x * jax.nn.sigmoid(y)


if __name__ == "__main__":
    key = jax.random.PRNGKey(0)
    kx, kw = jax.random.split(key)

    N, C, H, W = 2, 4, 16, 16
    x = jax.random.normal(kx, (N, C, H, W), dtype=jnp.float32)

    # Deterministic synthetic parameters (shapes from SpatialGate.__init__):
    conv_w = jax.random.normal(kw, (1, 2, K, K), dtype=jnp.float32) * 0.1  # Conv2d(2,1,7), no bias
    bn_gamma = jnp.array([1.25], dtype=jnp.float32)   # BatchNorm2d(1).weight
    bn_beta = jnp.array([0.10], dtype=jnp.float32)    # BatchNorm2d(1).bias
    bn_mean = jnp.array([0.05], dtype=jnp.float32)    # running_mean
    bn_var = jnp.array([0.80], dtype=jnp.float32)     # running_var

    out = spatial_gate(x, conv_w, bn_gamma, bn_beta, bn_mean, bn_var)
    out = jax.block_until_ready(out)

    ref = spatial_gate_reference(x, conv_w, bn_gamma, bn_beta, bn_mean, bn_var)
    np.testing.assert_allclose(np.asarray(out), np.asarray(ref), rtol=1e-4, atol=1e-5)

    print("KERNEL_OK")
</pallas_src>

<mosaic_0001>
module attributes {stable_mosaic.version = 11 : i64} {
  func.func @spatial_gate_kernel(%arg0: i32, %arg1: memref<98xf32, #tpu.memory_space<smem>>, %arg2: memref<1xf32, #tpu.memory_space<smem>>, %arg3: memref<1x4x256xf32, #tpu.memory_space<vmem>>, %arg4: memref<1x4x256xf32, #tpu.memory_space<vmem>>, %arg5: memref<1x358xf32, #tpu.memory_space<vmem>>, %arg6: memref<1x358xf32, #tpu.memory_space<vmem>>, %arg7: memref<1x352xf32, #tpu.memory_space<vmem>>, %arg8: memref<1x352xf32, #tpu.memory_space<vmem>>, %arg9: memref<1x352xf32, #tpu.memory_space<vmem>>, %arg10: memref<1x352xf32, #tpu.memory_space<vmem>>, %arg11: memref<1x352xf32, #tpu.memory_space<vmem>>, %arg12: memref<1x352xf32, #tpu.memory_space<vmem>>, %arg13: memref<1x352xf32, #tpu.memory_space<vmem>>, %arg14: memref<1x352xf32, #tpu.memory_space<vmem>>, %arg15: memref<1x352xf32, #tpu.memory_space<vmem>>, %arg16: memref<1x352xf32, #tpu.memory_space<vmem>>, %arg17: memref<1x352xf32, #tpu.memory_space<vmem>>, %arg18: memref<1x352xf32, #tpu.memory_space<vmem>>, %arg19: memref<1x352xf32, #tpu.memory_space<vmem>>, %arg20: memref<1x352xf32, #tpu.memory_space<vmem>>) attributes {dimension_semantics = [#tpu.dimension_semantics<parallel>], iteration_bounds = array<i64: 2>, scalar_prefetch = 2 : i64, scratch_operands = 16 : i64, tpu.core_type = #tpu.core_type<tc>, window_params = [{transform_indices = @transform_0, window_bounds = array<i64: 1, 4, 256>}, {transform_indices = @transform_1, window_bounds = array<i64: 1, 4, 256>}]} {
    %cst = arith.constant 0.000000e+00 : f32
    %0 = vector.broadcast %cst : f32 to vector<1x51xf32>
    %c0 = arith.constant 0 : index
    %c0_0 = arith.constant 0 : index
    %1 = vector.load %arg5[%c0, %c0_0] : memref<1x358xf32, #tpu.memory_space<vmem>>, vector<1x51xf32>
    tpu.vector_store %arg5[%c0, %c0_0], %0 {strides = array<i32>} : memref<1x358xf32, #tpu.memory_space<vmem>>, vector<1x51xf32>,
    %c0_1 = arith.constant 0 : index
    %c307 = arith.constant 307 : index
    %2 = vector.load %arg5[%c0_1, %c307] : memref<1x358xf32, #tpu.memory_space<vmem>>, vector<1x51xf32>
    tpu.vector_store %arg5[%c0_1, %c307], %0 {strides = array<i32>} : memref<1x358xf32, #tpu.memory_space<vmem>>, vector<1x51xf32>,
    %c0_2 = arith.constant 0 : index
    %c0_3 = arith.constant 0 : index
    %3 = vector.load %arg6[%c0_2, %c0_3] : memref<1x358xf32, #tpu.memory_space<vmem>>, vector<1x51xf32>
    tpu.vector_store %arg6[%c0_2, %c0_3], %0 {strides = array<i32>} : memref<1x358xf32, #tpu.memory_space<vmem>>, vector<1x51xf32>,
    %c0_4 = arith.constant 0 : index
    %c307_5 = arith.constant 307 : index
    %4 = vector.load %arg6[%c0_4, %c307_5] : memref<1x358xf32, #tpu.memory_space<vmem>>, vector<1x51xf32>
    tpu.vector_store %arg6[%c0_4, %c307_5], %0 {strides = array<i32>} : memref<1x358xf32, #tpu.memory_space<vmem>>, vector<1x51xf32>,
    %c0_6 = arith.constant 0 : index
    %c0_7 = arith.constant 0 : index
    %c0_8 = arith.constant 0 : index
    %5 = vector.load %arg3[%c0_6, %c0_7, %c0_8] : memref<1x4x256xf32, #tpu.memory_space<vmem>>, vector<1x4x256xf32>
    %6 = vector.shape_cast %5 : vector<1x4x256xf32> to vector<4x256xf32>
    %cst_9 = arith.constant dense<0xFF800000> : vector<256xf32>
    %7 = vector.multi_reduction <maximumf>, %6, %cst_9 [0] : vector<4x256xf32> to vector<256xf32>
    %8 = vector.shape_cast %7 : vector<256xf32> to vector<1x256xf32>
    %c0_10 = arith.constant 0 : index
    %c51 = arith.constant 51 : index
    %9 = vector.load %arg5[%c0_10, %c51] : memref<1x358xf32, #tpu.memory_space<vmem>>, vector<1x256xf32>
    tpu.vector_store %arg5[%c0_10, %c51], %8 {strides = array<i32>} : memref<1x358xf32, #tpu.memory_space<vmem>>, vector<1x256xf32>,
    %cst_11 = arith.constant dense<0.000000e+00> : vector<256xf32>
    %10 = vector.multi_reduction <add>, %6, %cst_11 [0] : vector<4x256xf32> to vector<256xf32>
    %11 = vector.shape_cast %10 : vector<256xf32> to vector<1x256xf32>
    %c0_12 = arith.constant 0 : index
    %c51_13 = arith.constant 51 : index
    %12 = vector.load %arg6[%c0_12, %c51_13] : memref<1x358xf32, #tpu.memory_space<vmem>>, vector<1x256xf32>
    tpu.vector_store %arg6[%c0_12, %c51_13], %11 {strides = array<i32>} : memref<1x358xf32, #tpu.memory_space<vmem>>, vector<1x256xf32>,
    %13 = tpu.iota {dimensions = array<i32: 1>} : vector<1x352xi32>
    %c16_i32 = arith.constant 16 : i32
    %c0_i32 = arith.constant 0 : i32
    %14 = arith.cmpi eq, %c16_i32, %c0_i32 : i32
    %c1_i32 = arith.constant 1 : i32
    %15 = arith.select %14, %c1_i32, %c16_i32 : i32
    %16 = vector.broadcast %15 : i32 to vector<1x352xi32>
    %17 = arith.remsi %13, %16 : vector<1x352xi32>
    %c0_i32_14 = arith.constant 0 : i32
    %18 = vector.broadcast %c0_i32_14 : i32 to vector<1x352xi32>
    %19 = arith.cmpi ne, %17, %18 : vector<1x352xi32>
    %c0_i32_15 = arith.constant 0 : i32
    %20 = vector.broadcast %c0_i32_15 : i32 to vector<1x352xi32>
    %21 = arith.cmpi slt, %17, %20 : vector<1x352xi32>
    %c0_i32_16 = arith.constant 0 : i32
    %22 = arith.cmpi slt, %15, %c0_i32_16 : i32
    %23 = vector.broadcast %22 : i1 to vector<1x352xi1>
    %24 = vector.broadcast %23 : vector<1x352xi1> to vector<1x352xi1>
    %25 = arith.xori %21, %24 : vector<1x352xi1>
    %26 = arith.andi %25, %19 : vector<1x352xi1>
    %27 = vector.broadcast %15 : i32 to vector<1x352xi32>
    %28 = arith.addi %17, %27 : vector<1x352xi32>
    %29 = arith.select %26, %28, %17 : vector<1x352xi1>, vector<1x352xi32>
    %c0_17 = arith.constant 0 : index
    %c0_18 = arith.constant 0 : index
    %30 = vector.load %arg5[%c0_17, %c0_18] : memref<1x358xf32, #tpu.memory_space<vmem>>, vector<1x352xf32>
    %c0_19 = arith.constant 0 : index
    %c0_20 = arith.constant 0 : index
    %31 = vector.load %arg6[%c0_19, %c0_20] : memref<1x358xf32, #tpu.memory_space<vmem>>, vector<1x352xf32>
    %c3_i32 = arith.constant 3 : i32
    %32 = vector.broadcast %c3_i32 : i32 to vector<1x352xi32>
    %33 = arith.cmpi sge, %29, %32 : vector<1x352xi32>
    %cst_21 = arith.constant 0.000000e+00 : f32
    %34 = vector.broadcast %cst_21 : f32 to vector<1x352xf32>
    %35 = arith.select %33, %30, %34 : vector<1x352xi1>, vector<1x352xf32>
    %cst_22 = arith.constant 0.000000e+00 : f32
    %36 = vector.broadcast %cst_22 : f32 to vector<1x352xf32>
    %37 = arith.select %33, %31, %36 : vector<1x352xi1>, vector<1x352xf32>
    %c0_23 = arith.constant 0 : index
    %c0_24 = arith.constant 0 : index
    %38 = vector.load %arg7[%c0_23, %c0_24] : memref<1x352xf32, #tpu.memory_space<vmem>>, vector<1x352xf32>
    tpu.vector_store %arg7[%c0_23, %c0_24], %35 {strides = array<i32>} : memref<1x352xf32, #tpu.memory_space<vmem>>, vector<1x352xf32>,
    %c0_25 = arith.constant 0 : index
    %c0_26 = arith.constant 0 : index
    %39 = vector.load %arg14[%c0_25, %c0_26] : memref<1x352xf32, #tpu.memory_space<vmem>>, vector<1x352xf32>
    tpu.vector_store %arg14[%c0_25, %c0_26], %37 {strides = array<i32>} : memref<1x352xf32, #tpu.memory_space<vmem>>, vector<1x352xf32>,
    %c0_27 = arith.constant 0 : index
    %c1 = arith.constant 1 : index
    %40 = vector.load %arg5[%c0_27, %c1] : memref<1x358xf32, #tpu.memory_space<vmem>>, vector<1x352xf32>
    %c0_28 = arith.constant 0 : index
    %c1_29 = arith.constant 1 : index
    %41 = vector.load %arg6[%c0_28, %c1_29] : memref<1x358xf32, #tpu.memory_space<vmem>>, vector<1x352xf32>
    %c2_i32 = arith.constant 2 : i32
    %42 = vector.broadcast %c2_i32 : i32 to vector<1x352xi32>
    %43 = arith.cmpi sge, %29, %42 : vector<1x352xi32>
    %cst_30 = arith.constant 0.000000e+00 : f32
    %44 = vector.broadcast %cst_30 : f32 to vector<1x352xf32>
    %45 = arith.select %43, %40, %44 : vector<1x352xi1>, vector<1x352xf32>
    %cst_31 = arith.constant 0.000000e+00 : f32
    %46 = vector.broadcast %cst_31 : f32 to vector<1x352xf32>
    %47 = arith.select %43, %41, %46 : vector<1x352xi1>, vector<1x352xf32>
    %c0_32 = arith.constant 0 : index
    %c0_33 = arith.constant 0 : index
    %48 = vector.load %arg8[%c0_32, %c0_33] : memref<1x352xf32, #tpu.memory_space<vmem>>, vector<1x352xf32>
    tpu.vector_store %arg8[%c0_32, %c0_33], %45 {strides = array<i32>} : memref<1x352xf32, #tpu.memory_space<vmem>>, vector<1x352xf32>,
    %c0_34 = arith.constant 0 : index
    %c0_35 = arith.constant 0 : index
    %49 = vector.load %arg15[%c0_34, %c0_35] : memref<1x352xf32, #tpu.memory_space<vmem>>, vector<1x352xf32>
    tpu.vector_store %arg15[%c0_34, %c0_35], %47 {strides = array<i32>} : memref<1x352xf32, #tpu.memory_space<vmem>>, vector<1x352xf32>,
    %c0_36 = arith.constant 0 : index
    %c2 = arith.constant 2 : index
    %50 = vector.load %arg5[%c0_36, %c2] : memref<1x358xf32, #tpu.memory_space<vmem>>, vector<1x352xf32>
    %c0_37 = arith.constant 0 : index
    %c2_38 = arith.constant 2 : index
    %51 = vector.load %arg6[%c0_37, %c2_38] : memref<1x358xf32, #tpu.memory_space<vmem>>, vector<1x352xf32>
    %c1_i32_39 = arith.constant 1 : i32
    %52 = vector.broadcast %c1_i32_39 : i32 to vector<1x352xi32>
    %53 = arith.cmpi sge, %29, %52 : vector<1x352xi32>
    %cst_40 = arith.constant 0.000000e+00 : f32
    %54 = vector.broadcast %cst_40 : f32 to vector<1x352xf32>
    %55 = arith.select %53, %50, %54 : vector<1x352xi1>, vector<1x352xf32>
    %cst_41 = arith.constant 0.000000e+00 : f32
    %56 = vector.broadcast %cst_41 : f32 to vector<1x352xf32>
    %57 = arith.select %53, %51, %56 : vector<1x352xi1>, vector<1x352xf32>
    %c0_42 = arith.constant 0 : index
    %c0_43 = arith.constant 0 : index
    %58 = vector.load %arg9[%c0_42, %c0_43] : memref<1x352xf32, #tpu.memory_space<vmem>>, vector<1x352xf32>
    tpu.vector_store %arg9[%c0_42, %c0_43], %55 {strides = array<i32>} : memref<1x352xf32, #tpu.memory_space<vmem>>, vector<1x352xf32>,
    %c0_44 = arith.constant 0 : index
    %c0_45 = arith.constant 0 : index
    %59 = vector.load %arg16[%c0_44, %c0_45] : memref<1x352xf32, #tpu.memory_space<vmem>>, vector<1x352xf32>
    tpu.vector_store %arg16[%c0_44, %c0_45], %57 {strides = array<i32>} : memref<1x352xf32, #tpu.memory_space<vmem>>, vector<1x352xf32>,
    %c0_46 = arith.constant 0 : index
    %c3 = arith.constant 3 : index
    %60 = vector.load %arg5[%c0_46, %c3] : memref<1x358xf32, #tpu.memory_space<vmem>>, vector<1x352xf32>
    %c0_47 = arith.constant 0 : index
    %c3_48 = arith.constant 3 : index
    %61 = vector.load %arg6[%c0_47, %c3_48] : memref<1x358xf32, #tpu.memory_space<vmem>>, vector<1x352xf32>
    %c0_49 = arith.constant 0 : index
    %c0_50 = arith.constant 0 : index
    %62 = vector.load %arg10[%c0_49, %c0_50] : memref<1x352xf32, #tpu.memory_space<vmem>>, vector<1x352xf32>
    tpu.vector_store %arg10[%c0_49, %c0_50], %60 {strides = array<i32>} : memref<1x352xf32, #tpu.memory_space<vmem>>, vector<1x352xf32>,
    %c0_51 = arith.constant 0 : index
    %c0_52 = arith.constant 0 : index
    %63 = vector.load %arg17[%c0_51, %c0_52] : memref<1x352xf32, #tpu.memory_space<vmem>>, vector<1x352xf32>
    tpu.vector_store %arg17[%c0_51, %c0_52], %61 {strides = array<i32>} : memref<1x352xf32, #tpu.memory_space<vmem>>, vector<1x352xf32>,
    %c0_53 = arith.constant 0 : index
    %c4 = arith.constant 4 : index
    %64 = vector.load %arg5[%c0_53, %c4] : memref<1x358xf32, #tpu.memory_space<vmem>>, vector<1x352xf32>
    %c0_54 = arith.constant 0 : index
    %c4_55 = arith.constant 4 : index
    %65 = vector.load %arg6[%c0_54, %c4_55] : memref<1x358xf32, #tpu.memory_space<vmem>>, vector<1x352xf32>
    %c15_i32 = arith.constant 15 : i32
    %66 = vector.broadcast %c15_i32 : i32 to vector<1x352xi32>
    %67 = arith.cmpi slt, %29, %66 : vector<1x352xi32>
    %cst_56 = arith.constant 0.000000e+00 : f32
    %68 = vector.broadcast %cst_56 : f32 to vector<1x352xf32>
    %69 = arith.select %67, %64, %68 : vector<1x352xi1>, vector<1x352xf32>
    %cst_57 = arith.constant 0.000000e+00 : f32
    %70 = vector.broadcast %cst_57 : f32 to vector<1x352xf32>
    %71 = arith.select %67, %65, %70 : vector<1x352xi1>, vector<1x352xf32>
    %c0_58 = arith.constant 0 : index
    %c0_59 = arith.constant 0 : index
    %72 = vector.load %arg11[%c0_58, %c0_59] : memref<1x352xf32, #tpu.memory_space<vmem>>, vector<1x352xf32>
    tpu.vector_store %arg11[%c0_58, %c0_59], %69 {strides = array<i32>} : memref<1x352xf32, #tpu.memory_space<vmem>>, vector<1x352xf32>,
    %c0_60 = arith.constant 0 : index
    %c0_61 = arith.constant 0 : index
    %73 = vector.load %arg18[%c0_60, %c0_61] : memref<1x352xf32, #tpu.memory_space<vmem>>, vector<1x352xf32>
    tpu.vector_store %arg18[%c0_60, %c0_61], %71 {strides = array<i32>} : memref<1x352xf32, #tpu.memory_space<vmem>>, vector<1x352xf32>,
    %c0_62 = arith.constant 0 : index
    %c5 = arith.constant 5 : index
    %74 = vector.load %arg5[%c0_62, %c5] : memref<1x358xf32, #tpu.memory_space<vmem>>, vector<1x352xf32>
    %c0_63 = arith.constant 0 : index
    %c5_64 = arith.constant 5 : index
    %75 = vector.load %arg6[%c0_63, %c5_64] : memref<1x358xf32, #tpu.memory_space<vmem>>, vector<1x352xf32>
    %c14_i32 = arith.constant 14 : i32
    %76 = vector.broadcast %c14_i32 : i32 to vector<1x352xi32>
    %77 = arith.cmpi slt, %29, %76 : vector<1x352xi32>
    %cst_65 = arith.constant 0.000000e+00 : f32
    %78 = vector.broadcast %cst_65 : f32 to vector<1x352xf32>
    %79 = arith.select %77, %74, %78 : vector<1x352xi1>, vector<1x352xf32>
    %cst_66 = arith.constant 0.000000e+00 : f32
    %80 = vector.broadcast %cst_66 : f32 to vector<1x352xf32>
    %81 = arith.select %77, %75, %80 : vector<1x352xi1>, vector<1x352xf32>
    %c0_67 = arith.constant 0 : index
    %c0_68 = arith.constant 0 : index
    %82 = vector.load %arg12[%c0_67, %c0_68] : memref<1x352xf32, #tpu.memory_space<vmem>>, vector<1x352xf32>
    tpu.vector_store %arg12[%c0_67, %c0_68], %79 {strides = array<i32>} : memref<1x352xf32, #tpu.memory_space<vmem>>, vector<1x352xf32>,
    %c0_69 = arith.constant 0 : index
    %c0_70 = arith.constant 0 : index
    %83 = vector.load %arg19[%c0_69, %c0_70] : memref<1x352xf32, #tpu.memory_space<vmem>>, vector<1x352xf32>
    tpu.vector_store %arg19[%c0_69, %c0_70], %81 {strides = array<i32>} : memref<1x352xf32, #tpu.memory_space<vmem>>, vector<1x352xf32>,
    %c0_71 = arith.constant 0 : index
    %c6 = arith.constant 6 : index
    %84 = vector.load %arg5[%c0_71, %c6] : memref<1x358xf32, #tpu.memory_space<vmem>>, vector<1x352xf32>
    %c0_72 = arith.constant 0 : index
    %c6_73 = arith.constant 6 : index
    %85 = vector.load %arg6[%c0_72, %c6_73] : memref<1x358xf32, #tpu.memory_space<vmem>>, vector<1x352xf32>
    %c13_i32 = arith.constant 13 : i32
    %86 = vector.broadcast %c13_i32 : i32 to vector<1x352xi32>
    %87 = arith.cmpi slt, %29, %86 : vector<1x352xi32>
    %cst_74 = arith.constant 0.000000e+00 : f32
    %88 = vector.broadcast %cst_74 : f32 to vector<1x352xf32>
    %89 = arith.select %87, %84, %88 : vector<1x352xi1>, vector<1x352xf32>
    %cst_75 = arith.constant 0.000000e+00 : f32
    %90 = vector.broadcast %cst_75 : f32 to vector<1x352xf32>
    %91 = arith.select %87, %85, %90 : vector<1x352xi1>, vector<1x352xf32>
    %c0_76 = arith.constant 0 : index
    %c0_77 = arith.constant 0 : index
    %92 = vector.load %arg13[%c0_76, %c0_77] : memref<1x352xf32, #tpu.memory_space<vmem>>, vector<1x352xf32>
    tpu.vector_store %arg13[%c0_76, %c0_77], %89 {strides = array<i32>} : memref<1x352xf32, #tpu.memory_space<vmem>>, vector<1x352xf32>,
    %c0_78 = arith.constant 0 : index
    %c0_79 = arith.constant 0 : index
    %93 = vector.load %arg20[%c0_78, %c0_79] : memref<1x352xf32, #tpu.memory_space<vmem>>, vector<1x352xf32>
    tpu.vector_store %arg20[%c0_78, %c0_79], %91 {strides = array<i32>} : memref<1x352xf32, #tpu.memory_space<vmem>>, vector<1x352xf32>,
    %c0_80 = arith.constant 0 : index
    %94 = memref.load %arg1[%c0_80] : memref<98xf32, #tpu.memory_space<smem>>
    %c1_81 = arith.constant 1 : index
    %95 = memref.load %arg1[%c1_81] : memref<98xf32, #tpu.memory_space<smem>>
    %c2_82 = arith.constant 2 : index
    %96 = memref.load %arg1[%c2_82] : memref<98xf32, #tpu.memory_space<smem>>
    %c3_83 = arith.constant 3 : index
    %97 = memref.load %arg1[%c3_83] : memref<98xf32, #tpu.memory_space<smem>>
    %c4_84 = arith.constant 4 : index
    %98 = memref.load %arg1[%c4_84] : memref<98xf32, #tpu.memory_space<smem>>
    %c5_85 = arith.constant 5 : index
    %99 = memref.load %arg1[%c5_85] : memref<98xf32, #tpu.memory_space<smem>>
    %c6_86 = arith.constant 6 : index
    %100 = memref.load %arg1[%c6_86] : memref<98xf32, #tpu.memory_space<smem>>
    %c7 = arith.constant 7 : index
    %101 = memref.load %arg1[%c7] : memref<98xf32, #tpu.memory_space<smem>>
    %c8 = arith.constant 8 : index
    %102 = memref.load %arg1[%c8] : memref<98xf32, #tpu.memory_space<smem>>
    %c9 = arith.constant 9 : index
    %103 = memref.load %arg1[%c9] : memref<98xf32, #tpu.memory_space<smem>>
    %c10 = arith.constant 10 : index
    %104 = memref.load %arg1[%c10] : memref<98xf32, #tpu.memory_space<smem>>
    %c11 = arith.constant 11 : index
    %105 = memref.load %arg1[%c11] : memref<98xf32, #tpu.memory_space<smem>>
    %c12 = arith.constant 12 : index
    %106 = memref.load %arg1[%c12] : memref<98xf32, #tpu.memory_space<smem>>
    %c13 = arith.constant 13 : index
    %107 = memref.load %arg1[%c13] : memref<98xf32, #tpu.memory_space<smem>>
    %c14 = arith.constant 14 : index
    %108 = memref.load %arg1[%c14] : memref<98xf32, #tpu.memory_space<smem>>
    %c15 = arith.constant 15 : index
    %109 = memref.load %arg1[%c15] : memref<98xf32, #tpu.memory_space<smem>>
    %c16 = arith.constant 16 : index
    %110 = memref.load %arg1[%c16] : memref<98xf32, #tpu.memory_space<smem>>
    %c17 = arith.constant 17 : index
    %111 = memref.load %arg1[%c17] : memref<98xf32, #tpu.memory_space<smem>>
    %c18 = arith.constant 18 : index
    %112 = memref.load %arg1[%c18] : memref<98xf32, #tpu.memory_space<smem>>
    %c19 = arith.constant 19 : index
    %113 = memref.load %arg1[%c19] : memref<98xf32, #tpu.memory_space<smem>>
    %c20 = arith.constant 20 : index
    %114 = memref.load %arg1[%c20] : memref<98xf32, #tpu.memory_space<smem>>
    %c21 = arith.constant 21 : index
    %115 = memref.load %arg1[%c21] : memref<98xf32, #tpu.memory_space<smem>>
    %c22 = arith.constant 22 : index
    %116 = memref.load %arg1[%c22] : memref<98xf32, #tpu.memory_space<smem>>
    %c23 = arith.constant 23 : index
    %117 = memref.load %arg1[%c23] : memref<98xf32, #tpu.memory_space<smem>>
    %c24 = arith.constant 24 : index
    %118 = memref.load %arg1[%c24] : memref<98xf32, #tpu.memory_space<smem>>
    %c25 = arith.constant 25 : index
    %119 = memref.load %arg1[%c25] : memref<98xf32, #tpu.memory_space<smem>>
    %c26 = arith.constant 26 : index
    %120 = memref.load %arg1[%c26] : memref<98xf32, #tpu.memory_space<smem>>
    %c27 = arith.constant 27 : index
    %121 = memref.load %arg1[%c27] : memref<98xf32, #tpu.memory_space<smem>>
    %c28 = arith.constant 28 : index
    %122 = memref.load %arg1[%c28] : memref<98xf32, #tpu.memory_space<smem>>
    %c29 = arith.constant 29 : index
    %123 = memref.load %arg1[%c29] : memref<98xf32, #tpu.memory_space<smem>>
    %c30 = arith.constant 30 : index
    %124 = memref.load %arg1[%c30] : memref<98xf32, #tpu.memory_space<smem>>
    %c31 = arith.constant 31 : index
    %125 = memref.load %arg1[%c31] : memref<98xf32, #tpu.memory_space<smem>>
    %c32 = arith.constant 32 : index
    %126 = memref.load %arg1[%c32] : memref<98xf32, #tpu.memory_space<smem>>
    %c33 = arith.constant 33 : index
    %127 = memref.load %arg1[%c33] : memref<98xf32, #tpu.memory_space<smem>>
    %c34 = arith.constant 34 : index
    %128 = memref.load %arg1[%c34] : memref<98xf32, #tpu.memory_space<smem>>
    %c35 = arith.constant 35 : index
    %129 = memref.load %arg1[%c35] : memref<98xf32, #tpu.memory_space<smem>>
    %c36 = arith.constant 36 : index
    %130 = memref.load %arg1[%c36] : memref<98xf32, #tpu.memory_space<smem>>
    %c37 = arith.constant 37 : index
    %131 = memref.load %arg1[%c37] : memref<98xf32, #tpu.memory_space<smem>>
    %c38 = arith.constant 38 : index
    %132 = memref.load %arg1[%c38] : memref<98xf32, #tpu.memory_space<smem>>
    %c39 = arith.constant 39 : index
    %133 = memref.load %arg1[%c39] : memref<98xf32, #tpu.memory_space<smem>>
    %c40 = arith.constant 40 : index
    %134 = memref.load %arg1[%c40] : memref<98xf32, #tpu.memory_space<smem>>
    %c41 = arith.constant 41 : index
    %135 = memref.load %arg1[%c41] : memref<98xf32, #tpu.memory_space<smem>>
    %c42 = arith.constant 42 : index
    %136 = memref.load %arg1[%c42] : memref<98xf32, #tpu.memory_space<smem>>
    %c43 = arith.constant 43 : index
    %137 = memref.load %arg1[%c43] : memref<98xf32, #tpu.memory_space<smem>>
    %c44 = arith.constant 44 : index
    %138 = memref.load %arg1[%c44] : memref<98xf32, #tpu.memory_space<smem>>
    %c45 = arith.constant 45 : index
    %139 = memref.load %arg1[%c45] : memref<98xf32, #tpu.memory_space<smem>>
    %c46 = arith.constant 46 : index
    %140 = memref.load %arg1[%c46] : memref<98xf32, #tpu.memory_space<smem>>
    %c47 = arith.constant 47 : index
    %141 = memref.load %arg1[%c47] : memref<98xf32, #tpu.memory_space<smem>>
    %c48 = arith.constant 48 : index
    %142 = memref.load %arg1[%c48] : memref<98xf32, #tpu.memory_space<smem>>
    %c49 = arith.constant 49 : index
    %143 = memref.load %arg1[%c49] : memref<98xf32, #tpu.memory_space<smem>>
    %c50 = arith.constant 50 : index
    %144 = memref.load %arg1[%c50] : memref<98xf32, #tpu.memory_space<smem>>
    %c51_87 = arith.constant 51 : index
    %145 = memref.load %arg1[%c51_87] : memref<98xf32, #tpu.memory_space<smem>>
    %c52 = arith.constant 52 : index
    %146 = memref.load %arg1[%c52] : memref<98xf32, #tpu.memory_space<smem>>
    %c53 = arith.constant 53 : index
    %147 = memref.load %arg1[%c53] : memref<98xf32, #tpu.memory_space<smem>>
    %c54 = arith.constant 54 : index
    %148 = memref.load %arg1[%c54] : memref<98xf32, #tpu.memory_space<smem>>
    %c55 = arith.constant 55 : index
    %149 = memref.load %arg1[%c55] : memref<98xf32, #tpu.memory_space<smem>>
    %c56 = arith.constant 56 : index
    %150 = memref.load %arg1[%c56] : memref<98xf32, #tpu.memory_space<smem>>
    %c57 = arith.constant 57 : index
    %151 = memref.load %arg1[%c57] : memref<98xf32, #tpu.memory_space<smem>>
    %c58 = arith.constant 58 : index
    %152 = memref.load %arg1[%c58] : memref<98xf32, #tpu.memory_space<smem>>
    %c59 = arith.constant 59 : index
    %153 = memref.load %arg1[%c59] : memref<98xf32, #tpu.memory_space<smem>>
    %c60 = arith.constant 60 : index
    %154 = memref.load %arg1[%c60] : memref<98xf32, #tpu.memory_space<smem>>
    %c61 = arith.constant 61 : index
    %155 = memref.load %arg1[%c61] : memref<98xf32, #tpu.memory_space<smem>>
    %c62 = arith.constant 62 : index
    %156 = memref.load %arg1[%c62] : memref<98xf32, #tpu.memory_space<smem>>
    %c63 = arith.constant 63 : index
    %157 = memref.load %arg1[%c63] : memref<98xf32, #tpu.memory_space<smem>>
    %c64 = arith.constant 64 : index
    %158 = memref.load %arg1[%c64] : memref<98xf32, #tpu.memory_space<smem>>
    %c65 = arith.constant 65 : index
    %159 = memref.load %arg1[%c65] : memref<98xf32, #tpu.memory_space<smem>>
    %c66 = arith.constant 66 : index
    %160 = memref.load %arg1[%c66] : memref<98xf32, #tpu.memory_space<smem>>
    %c67 = arith.constant 67 : index
    %161 = memref.load %arg1[%c67] : memref<98xf32, #tpu.memory_space<smem>>
    %c68 = arith.constant 68 : index
    %162 = memref.load %arg1[%c68] : memref<98xf32, #tpu.memory_space<smem>>
    %c69 = arith.constant 69 : index
    %163 = memref.load %arg1[%c69] : memref<98xf32, #tpu.memory_space<smem>>
    %c70 = arith.constant 70 : index
    %164 = memref.load %arg1[%c70] : memref<98xf32, #tpu.memory_space<smem>>
    %c71 = arith.constant 71 : index
    %165 = memref.load %arg1[%c71] : memref<98xf32, #tpu.memory_space<smem>>
    %c72 = arith.constant 72 : index
    %166 = memref.load %arg1[%c72] : memref<98xf32, #tpu.memory_space<smem>>
    %c73 = arith.constant 73 : index
    %167 = memref.load %arg1[%c73] : memref<98xf32, #tpu.memory_space<smem>>
    %c74 = arith.constant 74 : index
    %168 = memref.load %arg1[%c74] : memref<98xf32, #tpu.memory_space<smem>>
    %c75 = arith.constant 75 : index
    %169 = memref.load %arg1[%c75] : memref<98xf32, #tpu.memory_space<smem>>
    %c76 = arith.constant 76 : index
    %170 = memref.load %arg1[%c76] : memref<98xf32, #tpu.memory_space<smem>>
    %c77 = arith.constant 77 : index
    %171 = memref.load %arg1[%c77] : memref<98xf32, #tpu.memory_space<smem>>
    %c78 = arith.constant 78 : index
    %172 = memref.load %arg1[%c78] : memref<98xf32, #tpu.memory_space<smem>>
    %c79 = arith.constant 79 : index
    %173 = memref.load %arg1[%c79] : memref<98xf32, #tpu.memory_space<smem>>
    %c80 = arith.constant 80 : index
    %174 = memref.load %arg1[%c80] : memref<98xf32, #tpu.memory_space<smem>>
    %c81 = arith.constant 81 : index
    %175 = memref.load %arg1[%c81] : memref<98xf32, #tpu.memory_space<smem>>
    %c82 = arith.constant 82 : index
    %176 = memref.load %arg1[%c82] : memref<98xf32, #tpu.memory_space<smem>>
    %c83 = arith.constant 83 : index
    %177 = memref.load %arg1[%c83] : memref<98xf32, #tpu.memory_space<smem>>
    %c84 = arith.constant 84 : index
    %178 = memref.load %arg1[%c84] : memref<98xf32, #tpu.memory_space<smem>>
    %c85 = arith.constant 85 : index
    %179 = memref.load %arg1[%c85] : memref<98xf32, #tpu.memory_space<smem>>
    %c86 = arith.constant 86 : index
    %180 = memref.load %arg1[%c86] : memref<98xf32, #tpu.memory_space<smem>>
    %c87 = arith.constant 87 : index
    %181 = memref.load %arg1[%c87] : memref<98xf32, #tpu.memory_space<smem>>
    %c88 = arith.constant 88 : index
    %182 = memref.load %arg1[%c88] : memref<98xf32, #tpu.memory_space<smem>>
    %c89 = arith.constant 89 : index
    %183 = memref.load %arg1[%c89] : memref<98xf32, #tpu.memory_space<smem>>
    %c90 = arith.constant 90 : index
    %184 = memref.load %arg1[%c90] : memref<98xf32, #tpu.memory_space<smem>>
    %c91 = arith.constant 91 : index
    %185 = memref.load %arg1[%c91] : memref<98xf32, #tpu.memory_space<smem>>
    %c92 = arith.constant 92 : index
    %186 = memref.load %arg1[%c92] : memref<98xf32, #tpu.memory_space<smem>>
    %c93 = arith.constant 93 : index
    %187 = memref.load %arg1[%c93] : memref<98xf32, #tpu.memory_space<smem>>
    %c94 = arith.constant 94 : index
    %188 = memref.load %arg1[%c94] : memref<98xf32, #tpu.memory_space<smem>>
    %c95 = arith.constant 95 : index
    %189 = memref.load %arg1[%c95] : memref<98xf32, #tpu.memory_space<smem>>
    %c96 = arith.constant 96 : index
    %190 = memref.load %arg1[%c96] : memref<98xf32, #tpu.memory_space<smem>>
    %c97 = arith.constant 97 : index
    %191 = memref.load %arg1[%c97] : memref<98xf32, #tpu.memory_space<smem>>
    %c0_88 = arith.constant 0 : index
    %c0_89 = arith.constant 0 : index
    %192 = vector.load %arg7[%c0_88, %c0_89] : memref<1x352xf32, #tpu.memory_space<vmem>>, vector<1x256xf32>
    %193 = vector.broadcast %94 : f32 to vector<1x256xf32>
    %194 = arith.mulf %193, %192 : vector<1x256xf32>
    %c0_90 = arith.constant 0 : index
    %c0_91 = arith.constant 0 : index
    %195 = vector.load %arg14[%c0_90, %c0_91] : memref<1x352xf32, #tpu.memory_space<vmem>>, vector<1x256xf32>
    %196 = vector.broadcast %143 : f32 to vector<1x256xf32>
    %197 = arith.mulf %196, %195 : vector<1x256xf32>
    %198 = arith.addf %194, %197 : vector<1x256xf32>
    %c0_92 = arith.constant 0 : index
    %c16_93 = arith.constant 16 : index
    %199 = vector.load %arg7[%c0_92, %c16_93] : memref<1x352xf32, #tpu.memory_space<vmem>>, vector<1x256xf32>
    %200 = vector.broadcast %101 : f32 to vector<1x256xf32>
    %201 = arith.mulf %200, %199 : vector<1x256xf32>
    %c0_94 = arith.constant 0 : index
    %c16_95 = arith.constant 16 : index
    %202 = vector.load %arg14[%c0_94, %c16_95] : memref<1x352xf32, #tpu.memory_space<vmem>>, vector<1x256xf32>
    %203 = vector.broadcast %150 : f32 to vector<1x256xf32>
    %204 = arith.mulf %203, %202 : vector<1x256xf32>
    %205 = arith.addf %201, %204 : vector<1x256xf32>
    %206 = arith.addf %198, %205 : vector<1x256xf32>
    %c0_96 = arith.constant 0 : index
    %c32_97 = arith.constant 32 : index
    %207 = vector.load %arg7[%c0_96, %c32_97] : memref<1x352xf32, #tpu.memory_space<vmem>>, vector<1x256xf32>
    %208 = vector.broadcast %108 : f32 to vector<1x256xf32>
    %209 = arith.mulf %208, %207 : vector<1x256xf32>
    %c0_98 = arith.constant 0 : index
    %c32_99 = arith.constant 32 : index
    %210 = vector.load %arg14[%c0_98, %c32_99] : memref<1x352xf32, #tpu.memory_space<vmem>>, vector<1x256xf32>
    %211 = vector.broadcast %157 : f32 to vector<1x256xf32>
    %212 = arith.mulf %211, %210 : vector<1x256xf32>
    %213 = arith.addf %209, %212 : vector<1x256xf32>
    %214 = arith.addf %206, %213 : vector<1x256xf32>
    %c0_100 = arith.constant 0 : index
    %c48_101 = arith.constant 48 : index
    %215 = vector.load %arg7[%c0_100, %c48_101] : memref<1x352xf32, #tpu.memory_space<vmem>>, vector<1x256xf32>
    %216 = vector.broadcast %115 : f32 to vector<1x256xf32>
    %217 = arith.mulf %216, %215 : vector<1x256xf32>
    %c0_102 = arith.constant 0 : index
    %c48_103 = arith.constant 48 : index
    %218 = vector.load %arg14[%c0_102, %c48_103] : memref<1x352xf32, #tpu.memory_space<vmem>>, vector<1x256xf32>
    %219 = vector.broadcast %164 : f32 to vector<1x256xf32>
    %220 = arith.mulf %219, %218 : vector<1x256xf32>
    %221 = arith.addf %217, %220 : vector<1x256xf32>
    %222 = arith.addf %214, %221 : vector<1x256xf32>
    %c0_104 = arith.constant 0 : index
    %c64_105 = arith.constant 64 : index
    %223 = vector.load %arg7[%c0_104, %c64_105] : memref<1x352xf32, #tpu.memory_space<vmem>>, vector<1x256xf32>
    %224 = vector.broadcast %122 : f32 to vector<1x256xf32>
    %225 = arith.mulf %224, %223 : vector<1x256xf32>
    %c0_106 = arith.constant 0 : index
    %c64_107 = arith.constant 64 : index
    %226 = vector.load %arg14[%c0_106, %c64_107] : memref<1x352xf32, #tpu.memory_space<vmem>>, vector<1x256xf32>
    %227 = vector.broadcast %171 : f32 to vector<1x256xf32>
    %228 = arith.mulf %227, %226 : vector<1x256xf32>
    %229 = arith.addf %225, %228 : vector<1x256xf32>
    %230 = arith.addf %222, %229 : vector<1x256xf32>
    %c0_108 = arith.constant 0 : index
    %c80_109 = arith.constant 80 : index
    %231 = vector.load %arg7[%c0_108, %c80_109] : memref<1x352xf32, #tpu.memory_space<vmem>>, vector<1x256xf32>
    %232 = vector.broadcast %129 : f32 to vector<1x256xf32>
    %233 = arith.mulf %232, %231 : vector<1x256xf32>
    %c0_110 = arith.constant 0 : index
    %c80_111 = arith.constant 80 : index
    %234 = vector.load %arg14[%c0_110, %c80_111] : memref<1x352xf32, #tpu.memory_space<vmem>>, vector<1x256xf32>
    %235 = vector.broadcast %178 : f32 to vector<1x256xf32>
    %236 = arith.mulf %235, %234 : vector<1x256xf32>
    %237 = arith.addf %233, %236 : vector<1x256xf32>
    %238 = arith.addf %230, %237 : vector<1x256xf32>
    %c0_112 = arith.constant 0 : index
    %c96_113 = arith.constant 96 : index
    %239 = vector.load %arg7[%c0_112, %c96_113] : memref<1x352xf32, #tpu.memory_space<vmem>>, vector<1x256xf32>
    %240 = vector.broadcast %136 : f32 to vector<1x256xf32>
    %241 = arith.mulf %240, %239 : vector<1x256xf32>
    %c0_114 = arith.constant 0 : index
    %c96_115 = arith.constant 96 : index
    %242 = vector.load %arg14[%c0_114, %c96_115] : memref<1x352xf32, #tpu.memory_space<vmem>>, vector<1x256xf32>
    %243 = vector.broadcast %185 : f32 to vector<1x256xf32>
    %244 = arith.mulf %243, %242 : vector<1x256xf32>
    %245 = arith.addf %241, %244 : vector<1x256xf32>
    %246 = arith.addf %238, %245 : vector<1x256xf32>
    %c0_116 = arith.constant 0 : index
    %c0_117 = arith.constant 0 : index
    %247 = vector.load %arg8[%c0_116, %c0_117] : memref<1x352xf32, #tpu.memory_space<vmem>>, vector<1x256xf32>
    %248 = vector.broadcast %95 : f32 to vector<1x256xf32>
    %249 = arith.mulf %248, %247 : vector<1x256xf32>
    %c0_118 = arith.constant 0 : index
    %c0_119 = arith.constant 0 : index
    %250 = vector.load %arg15[%c0_118, %c0_119] : memref<1x352xf32, #tpu.memory_space<vmem>>, vector<1x256xf32>
    %251 = vector.broadcast %144 : f32 to vector<1x256xf32>
    %252 = arith.mulf %251, %250 : vector<1x256xf32>
    %253 = arith.addf %249, %252 : vector<1x256xf32>
    %254 = arith.addf %246, %253 : vector<1x256xf32>
    %c0_120 = arith.constant 0 : index
    %c16_121 = arith.constant 16 : index
    %255 = vector.load %arg8[%c0_120, %c16_121] : memref<1x352xf32, #tpu.memory_space<vmem>>, vector<1x256xf32>
    %256 = vector.broadcast %102 : f32 to vector<1x256xf32>
    %257 = arith.mulf %256, %255 : vector<1x256xf32>
    %c0_122 = arith.constant 0 : index
    %c16_123 = arith.constant 16 : index
    %258 = vector.load %arg15[%c0_122, %c16_123] : memref<1x352xf32, #tpu.memory_space<vmem>>, vector<1x256xf32>
    %259 = vector.broadcast %151 : f32 to vector<1x256xf32>
    %260 = arith.mulf %259, %258 : vector<1x256xf32>
    %261 = arith.addf %257, %260 : vector<1x256xf32>
    %262 = arith.addf %254, %261 : vector<1x256xf32>
    %c0_124 = arith.constant 0 : index
    %c32_125 = arith.constant 32 : index
    %263 = vector.load %arg8[%c0_124, %c32_125] : memref<1x352xf32, #tpu.memory_space<vmem>>, vector<1x256xf32>
    %264 = vector.broadcast %109 : f32 to vector<1x256xf32>
    %265 = arith.mulf %264, %263 : vector<1x256xf32>
    %c0_126 = arith.constant 0 : index
    %c32_127 = arith.constant 32 : index
    %266 = vector.load %arg15[%c0_126, %c32_127] : memref<1x352xf32, #tpu.memory_space<vmem>>, vector<1x256xf32>
    %267 = vector.broadcast %158 : f32 to vector<1x256xf32>
    %268 = arith.mulf %267, %266 : vector<1x256xf32>
    %269 = arith.addf %265, %268 : vector<1x256xf32>
    %270 = arith.addf %262, %269 : vector<1x256xf32>
    %c0_128 = arith.constant 0 : index
    %c48_129 = arith.constant 48 : index
    %271 = vector.load %arg8[%c0_128, %c48_129] : memref<1x352xf32, #tpu.memory_space<vmem>>, vector<1x256xf32>
    %272 = vector.broadcast %116 : f32 to vector<1x256xf32>
    %273 = arith.mulf %272, %271 : vector<1x256xf32>
    %c0_130 = arith.constant 0 : index
    %c48_131 = arith.constant 48 : index
    %274 = vector.load %arg15[%c0_130, %c48_131] : memref<1x352xf32, #tpu.memory_space<vmem>>, vector<1x256xf32>
    %275 = vector.broadcast %165 : f32 to vector<1x256xf32>
    %276 = arith.mulf %275, %274 : vector<1x256xf32>
    %277 = arith.addf %273, %276 : vector<1x256xf32>
    %278 = arith.addf %270, %277 : vector<1x256xf32>
    %c0_132 = arith.constant 0 : index
    %c64_133 = arith.constant 64 : index
    %279 = vector.load %arg8[%c0_132, %c64_133] : memref<1x352xf32, #tpu.memory_space<vmem>>, vector<1x256xf32>
    %280 = vector.broadcast %123 : f32 to vector<1x256xf32>
    %281 = arith.mulf %280, %279 : vector<1x256xf32>
    %c0_134 = arith.constant 0 : index
    %c64_135 = arith.constant 64 : index
    %282 = vector.load %arg15[%c0_134, %c64_135] : memref<1x352xf32, #tpu.memory_space<vmem>>, vector<1x256xf32>
    %283 = vector.broadcast %172 : f32 to vector<1x256xf32>
    %284 = arith.mulf %283, %282 : vector<1x256xf32>
    %285 = arith.addf %281, %284 : vector<1x256xf32>
    %286 = arith.addf %278, %285 : vector<1x256xf32>
    %c0_136 = arith.constant 0 : index
    %c80_137 = arith.constant 80 : index
    %287 = vector.load %arg8[%c0_136, %c80_137] : memref<1x352xf32, #tpu.memory_space<vmem>>, vector<1x256xf32>
    %288 = vector.broadcast %130 : f32 to vector<1x256xf32>
    %289 = arith.mulf %288, %287 : vector<1x256xf32>
    %c0_138 = arith.constant 0 : index
    %c80_139 = arith.constant 80 : index
    %290 = vector.load %arg15[%c0_138, %c80_139] : memref<1x352xf32, #tpu.memory_space<vmem>>, vector<1x256xf32>
    %291 = vector.broadcast %179 : f32 to vector<1x256xf32>
    %292 = arith.mulf %291, %290 : vector<1x256xf32>
    %293 = arith.addf %289, %292 : vector<1x256xf32>
    %294 = arith.addf %286, %293 : vector<1x256xf32>
    %c0_140 = arith.constant 0 : index
    %c96_141 = arith.constant 96 : index
    %295 = vector.load %arg8[%c0_140, %c96_141] : memref<1x352xf32, #tpu.memory_space<vmem>>, vector<1x256xf32>
    %296 = vector.broadcast %137 : f32 to vector<1x256xf32>
    %297 = arith.mulf %296, %295 : vector<1x256xf32>
    %c0_142 = arith.constant 0 : index
    %c96_143 = arith.constant 96 : index
    %298 = vector.load %arg15[%c0_142, %c96_143] : memref<1x352xf32, #tpu.memory_space<vmem>>, vector<1x256xf32>
    %299 = vector.broadcast %186 : f32 to vector<1x256xf32>
    %300 = arith.mulf %299, %298 : vector<1x256xf32>
    %301 = arith.addf %297, %300 : vector<1x256xf32>
    %302 = arith.addf %294, %301 : vector<1x256xf32>
    %c0_144 = arith.constant 0 : index
    %c0_145 = arith.constant 0 : index
    %303 = vector.load %arg9[%c0_144, %c0_145] : memref<1x352xf32, #tpu.memory_space<vmem>>, vector<1x256xf32>
    %304 = vector.broadcast %96 : f32 to vector<1x256xf32>
    %305 = arith.mulf %304, %303 : vector<1x256xf32>
    %c0_146 = arith.constant 0 : index
    %c0_147 = arith.constant 0 : index
    %306 = vector.load %arg16[%c0_146, %c0_147] : memref<1x352xf32, #tpu.memory_space<vmem>>, vector<1x256xf32>
    %307 = vector.broadcast %145 : f32 to vector<1x256xf32>
    %308 = arith.mulf %307, %306 : vector<1x256xf32>
    %309 = arith.addf %305, %308 : vector<1x256xf32>
    %310 = arith.addf %302, %309 : vector<1x256xf32>
    %c0_148 = arith.constant 0 : index
    %c16_149 = arith.constant 16 : index
    %311 = vector.load %arg9[%c0_148, %c16_149] : memref<1x352xf32, #tpu.memory_space<vmem>>, vector<1x256xf32>
    %312 = vector.broadcast %103 : f32 to vector<1x256xf32>
    %313 = arith.mulf %312, %311 : vector<1x256xf32>
    %c0_150 = arith.constant 0 : index
    %c16_151 = arith.constant 16 : index
    %314 = vector.load %arg16[%c0_150, %c16_151] : memref<1x352xf32, #tpu.memory_space<vmem>>, vector<1x256xf32>
    %315 = vector.broadcast %152 : f32 to vector<1x256xf32>
    %316 = arith.mulf %315, %314 : vector<1x256xf32>
    %317 = arith.addf %313, %316 : vector<1x256xf32>
    %318 = arith.addf %310, %317 : vector<1x256xf32>
    %c0_152 = arith.constant 0 : index
    %c32_153 = arith.constant 32 : index
    %319 = vector.load %arg9[%c0_152, %c32_153] : memref<1x352xf32, #tpu.memory_space<vmem>>, vector<1x256xf32>
    %320 = vector.broadcast %110 : f32 to vector<1x256xf32>
    %321 = arith.mulf %320, %319 : vector<1x256xf32>
    %c0_154 = arith.constant 0 : index
    %c32_155 = arith.constant 32 : index
    %322 = vector.load %arg16[%c0_154, %c32_155] : memref<1x352xf32, #tpu.memory_space<vmem>>, vector<1x256xf32>
    %323 = vector.broadcast %159 : f32 to vector<1x256xf32>
    %324 = arith.mulf %323, %322 : vector<1x256xf32>
    %325 = arith.addf %321, %324 : vector<1x256xf32>
    %326 = arith.addf %318, %325 : vector<1x256xf32>
    %c0_156 = arith.constant 0 : index
    %c48_157 = arith.constant 48 : index
    %327 = vector.load %arg9[%c0_156, %c48_157] : memref<1x352xf32, #tpu.memory_space<vmem>>, vector<1x256xf32>
    %328 = vector.broadcast %117 : f32 to vector<1x256xf32>
    %329 = arith.mulf %328, %327 : vector<1x256xf32>
    %c0_158 = arith.constant 0 : index
    %c48_159 = arith.constant 48 : index
    %330 = vector.load %arg16[%c0_158, %c48_159] : memref<1x352xf32, #tpu.memory_space<vmem>>, vector<1x256xf32>
    %331 = vector.broadcast %166 : f32 to vector<1x256xf32>
    %332 = arith.mulf %331, %330 : vector<1x256xf32>
    %333 = arith.addf %329, %332 : vector<1x256xf32>
    %334 = arith.addf %326, %333 : vector<1x256xf32>
    %c0_160 = arith.constant 0 : index
    %c64_161 = arith.constant 64 : index
    %335 = vector.load %arg9[%c0_160, %c64_161] : memref<1x352xf32, #tpu.memory_space<vmem>>, vector<1x256xf32>
    %336 = vector.broadcast %124 : f32 to vector<1x256xf32>
    %337 = arith.mulf %336, %335 : vector<1x256xf32>
    %c0_162 = arith.constant 0 : index
    %c64_163 = arith.constant 64 : index
    %338 = vector.load %arg16[%c0_162, %c64_163] : memref<1x352xf32, #tpu.memory_space<vmem>>, vector<1x256xf32>
    %339 = vector.broadcast %173 : f32 to vector<1x256xf32>
    %340 = arith.mulf %339, %338 : vector<1x256xf32>
    %341 = arith.addf %337, %340 : vector<1x256xf32>
    %342 = arith.addf %334, %341 : vector<1x256xf32>
    %c0_164 = arith.constant 0 : index
    %c80_165 = arith.constant 80 : index
    %343 = vector.load %arg9[%c0_164, %c80_165] : memref<1x352xf32, #tpu.memory_space<vmem>>, vector<1x256xf32>
    %344 = vector.broadcast %131 : f32 to vector<1x256xf32>
    %345 = arith.mulf %344, %343 : vector<1x256xf32>
    %c0_166 = arith.constant 0 : index
    %c80_167 = arith.constant 80 : index
    %346 = vector.load %arg16[%c0_166, %c80_167] : memref<1x352xf32, #tpu.memory_space<vmem>>, vector<1x256xf32>
    %347 = vector.broadcast %180 : f32 to vector<1x256xf32>
    %348 = arith.mulf %347, %346 : vector<1x256xf32>
    %349 = arith.addf %345, %348 : vector<1x256xf32>
    %350 = arith.addf %342, %349 : vector<1x256xf32>
    %c0_168 = arith.constant 0 : index
    %c96_169 = arith.constant 96 : index
    %351 = vector.load %arg9[%c0_168, %c96_169] : memref<1x352xf32, #tpu.memory_space<vmem>>, vector<1x256xf32>
    %352 = vector.broadcast %138 : f32 to vector<1x256xf32>
    %353 = arith.mulf %352, %351 : vector<1x256xf32>
    %c0_170 = arith.constant 0 : index
    %c96_171 = arith.constant 96 : index
    %354 = vector.load %arg16[%c0_170, %c96_171] : memref<1x352xf32, #tpu.memory_space<vmem>>, vector<1x256xf32>
    %355 = vector.broadcast %187 : f32 to vector<1x256xf32>
    %356 = arith.mulf %355, %354 : vector<1x256xf32>
    %357 = arith.addf %353, %356 : vector<1x256xf32>
    %358 = arith.addf %350, %357 : vector<1x256xf32>
    %c0_172 = arith.constant 0 : index
    %c0_173 = arith.constant 0 : index
    %359 = vector.load %arg10[%c0_172, %c0_173] : memref<1x352xf32, #tpu.memory_space<vmem>>, vector<1x256xf32>
    %360 = vector.broadcast %97 : f32 to vector<1x256xf32>
    %361 = arith.mulf %360, %359 : vector<1x256xf32>
    %c0_174 = arith.constant 0 : index
    %c0_175 = arith.constant 0 : index
    %362 = vector.load %arg17[%c0_174, %c0_175] : memref<1x352xf32, #tpu.memory_space<vmem>>, vector<1x256xf32>
    %363 = vector.broadcast %146 : f32 to vector<1x256xf32>
    %364 = arith.mulf %363, %362 : vector<1x256xf32>
    %365 = arith.addf %361, %364 : vector<1x256xf32>
    %366 = arith.addf %358, %365 : vector<1x256xf32>
    %c0_176 = arith.constant 0 : index
    %c16_177 = arith.constant 16 : index
    %367 = vector.load %arg10[%c0_176, %c16_177] : memref<1x352xf32, #tpu.memory_space<vmem>>, vector<1x256xf32>
    %368 = vector.broadcast %104 : f32 to vector<1x256xf32>
    %369 = arith.mulf %368, %367 : vector<1x256xf32>
    %c0_178 = arith.constant 0 : index
    %c16_179 = arith.constant 16 : index
    %370 = vector.load %arg17[%c0_178, %c16_179] : memref<1x352xf32, #tpu.memory_space<vmem>>, vector<1x256xf32>
    %371 = vector.broadcast %153 : f32 to vector<1x256xf32>
    %372 = arith.mulf %371, %370 : vector<1x256xf32>
    %373 = arith.addf %369, %372 : vector<1x256xf32>
    %374 = arith.addf %366, %373 : vector<1x256xf32>
    %c0_180 = arith.constant 0 : index
    %c32_181 = arith.constant 32 : index
    %375 = vector.load %arg10[%c0_180, %c32_181] : memref<1x352xf32, #tpu.memory_space<vmem>>, vector<1x256xf32>
    %376 = vector.broadcast %111 : f32 to vector<1x256xf32>
    %377 = arith.mulf %376, %375 : vector<1x256xf32>
    %c0_182 = arith.constant 0 : index
    %c32_183 = arith.constant 32 : index
    %378 = vector.load %arg17[%c0_182, %c32_183] : memref<1x352xf32, #tpu.memory_space<vmem>>, vector<1x256xf32>
    %379 = vector.broadcast %160 : f32 to vector<1x256xf32>
    %380 = arith.mulf %379, %378 : vector<1x256xf32>
    %381 = arith.addf %377, %380 : vector<1x256xf32>
    %382 = arith.addf %374, %381 : vector<1x256xf32>
    %c0_184 = arith.constant 0 : index
    %c48_185 = arith.constant 48 : index
    %383 = vector.load %arg10[%c0_184, %c48_185] : memref<1x352xf32, #tpu.memory_space<vmem>>, vector<1x256xf32>
    %384 = vector.broadcast %118 : f32 to vector<1x256xf32>
    %385 = arith.mulf %384, %383 : vector<1x256xf32>
    %c0_186 = arith.constant 0 : index
    %c48_187 = arith.constant 48 : index
    %386 = vector.load %arg17[%c0_186, %c48_187] : memref<1x352xf32, #tpu.memory_space<vmem>>, vector<1x256xf32>
    %387 = vector.broadcast %167 : f32 to vector<1x256xf32>
    %388 = arith.mulf %387, %386 : vector<1x256xf32>
    %389 = arith.addf %385, %388 : vector<1x256xf32>
    %390 = arith.addf %382, %389 : vector<1x256xf32>
    %c0_188 = arith.constant 0 : index
    %c64_189 = arith.constant 64 : index
    %391 = vector.load %arg10[%c0_188, %c64_189] : memref<1x352xf32, #tpu.memory_space<vmem>>, vector<1x256xf32>
    %392 = vector.broadcast %125 : f32 to vector<1x256xf32>
    %393 = arith.mulf %392, %391 : vector<1x256xf32>
    %c0_190 = arith.constant 0 : index
    %c64_191 = arith.constant 64 : index
    %394 = vector.load %arg17[%c0_190, %c64_191] : memref<1x352xf32, #tpu.memory_space<vmem>>, vector<1x256xf32>
    %395 = vector.broadcast %174 : f32 to vector<1x256xf32>
    %396 = arith.mulf %395, %394 : vector<1x256xf32>
    %397 = arith.addf %393, %396 : vector<1x256xf32>
    %398 = arith.addf %390, %397 : vector<1x256xf32>
    %c0_192 = arith.constant 0 : index
    %c80_193 = arith.constant 80 : index
    %399 = vector.load %arg10[%c0_192, %c80_193] : memref<1x352xf32, #tpu.memory_space<vmem>>, vector<1x256xf32>
    %400 = vector.broadcast %132 : f32 to vector<1x256xf32>
    %401 = arith.mulf %400, %399 : vector<1x256xf32>
    %c0_194 = arith.constant 0 : index
    %c80_195 = arith.constant 80 : index
    %402 = vector.load %arg17[%c0_194, %c80_195] : memref<1x352xf32, #tpu.memory_space<vmem>>, vector<1x256xf32>
    %403 = vector.broadcast %181 : f32 to vector<1x256xf32>
    %404 = arith.mulf %403, %402 : vector<1x256xf32>
    %405 = arith.addf %401, %404 : vector<1x256xf32>
    %406 = arith.addf %398, %405 : vector<1x256xf32>
    %c0_196 = arith.constant 0 : index
    %c96_197 = arith.constant 96 : index
    %407 = vector.load %arg10[%c0_196, %c96_197] : memref<1x352xf32, #tpu.memory_space<vmem>>, vector<1x256xf32>
    %408 = vector.broadcast %139 : f32 to vector<1x256xf32>
    %409 = arith.mulf %408, %407 : vector<1x256xf32>
    %c0_198 = arith.constant 0 : index
    %c96_199 = arith.constant 96 : index
    %410 = vector.load %arg17[%c0_198, %c96_199] : memref<1x352xf32, #tpu.memory_space<vmem>>, vector<1x256xf32>
    %411 = vector.broadcast %188 : f32 to vector<1x256xf32>
    %412 = arith.mulf %411, %410 : vector<1x256xf32>
    %413 = arith.addf %409, %412 : vector<1x256xf32>
    %414 = arith.addf %406, %413 : vector<1x256xf32>
    %c0_200 = arith.constant 0 : index
    %c0_201 = arith.constant 0 : index
    %415 = vector.load %arg11[%c0_200, %c0_201] : memref<1x352xf32, #tpu.memory_space<vmem>>, vector<1x256xf32>
    %416 = vector.broadcast %98 : f32 to vector<1x256xf32>
    %417 = arith.mulf %416, %415 : vector<1x256xf32>
    %c0_202 = arith.constant 0 : index
    %c0_203 = arith.constant 0 : index
    %418 = vector.load %arg18[%c0_202, %c0_203] : memref<1x352xf32, #tpu.memory_space<vmem>>, vector<1x256xf32>
    %419 = vector.broadcast %147 : f32 to vector<1x256xf32>
    %420 = arith.mulf %419, %418 : vector<1x256xf32>
    %421 = arith.addf %417, %420 : vector<1x256xf32>
    %422 = arith.addf %414, %421 : vector<1x256xf32>
    %c0_204 = arith.constant 0 : index
    %c16_205 = arith.constant 16 : index
    %423 = vector.load %arg11[%c0_204, %c16_205] : memref<1x352xf32, #tpu.memory_space<vmem>>, vector<1x256xf32>
    %424 = vector.broadcast %105 : f32 to vector<1x256xf32>
    %425 = arith.mulf %424, %423 : vector<1x256xf32>
    %c0_206 = arith.constant 0 : index
    %c16_207 = arith.constant 16 : index
    %426 = vector.load %arg18[%c0_206, %c16_207] : memref<1x352xf32, #tpu.memory_space<vmem>>, vector<1x256xf32>
    %427 = vector.broadcast %154 : f32 to vector<1x256xf32>
    %428 = arith.mulf %427, %426 : vector<1x256xf32>
    %429 = arith.addf %425, %428 : vector<1x256xf32>
    %430 = arith.addf %422, %429 : vector<1x256xf32>
    %c0_208 = arith.constant 0 : index
    %c32_209 = arith.constant 32 : index
    %431 = vector.load %arg11[%c0_208, %c32_209] : memref<1x352xf32, #tpu.memory_space<vmem>>, vector<1x256xf32>
    %432 = vector.broadcast %112 : f32 to vector<1x256xf32>
    %433 = arith.mulf %432, %431 : vector<1x256xf32>
    %c0_210 = arith.constant 0 : index
    %c32_211 = arith.constant 32 : index
    %434 = vector.load %arg18[%c0_210, %c32_211] : memref<1x352xf32, #tpu.memory_space<vmem>>, vector<1x256xf32>
    %435 = vector.broadcast %161 : f32 to vector<1x256xf32>
    %436 = arith.mulf %435, %434 : vector<1x256xf32>
    %437 = arith.addf %433, %436 : vector<1x256xf32>
    %438 = arith.addf %430, %437 : vector<1x256xf32>
    %c0_212 = arith.constant 0 : index
    %c48_213 = arith.constant 48 : index
    %439 = vector.load %arg11[%c0_212, %c48_213] : memref<1x352xf32, #tpu.memory_space<vmem>>, vector<1x256xf32>
    %440 = vector.broadcast %119 : f32 to vector<1x256xf32>
    %441 = arith.mulf %440, %439 : vector<1x256xf32>
    %c0_214 = arith.constant 0 : index
    %c48_215 = arith.constant 48 : index
    %442 = vector.load %arg18[%c0_214, %c48_215] : memref<1x352xf32, #tpu.memory_space<vmem>>, vector<1x256xf32>
    %443 = vector.broadcast %168 : f32 to vector<1x256xf32>
    %444 = arith.mulf %443, %442 : vector<1x256xf32>
    %445 = arith.addf %441, %444 : vector<1x256xf32>
    %446 = arith.addf %438, %445 : vector<1x256xf32>
    %c0_216 = arith.constant 0 : index
    %c64_217 = arith.constant 64 : index
    %447 = vector.load %arg11[%c0_216, %c64_217] : memref<1x352xf32, #tpu.memory_space<vmem>>, vector<1x256xf32>
    %448 = vector.broadcast %126 : f32 to vector<1x256xf32>
    %449 = arith.mulf %448, %447 : vector<1x256xf32>
    %c0_218 = arith.constant 0 : index
    %c64_219 = arith.constant 64 : index
    %450 = vector.load %arg18[%c0_218, %c64_219] : memref<1x352xf32, #tpu.memory_space<vmem>>, vector<1x256xf32>
    %451 = vector.broadcast %175 : f32 to vector<1x256xf32>
    %452 = arith.mulf %451, %450 : vector<1x256xf32>
    %453 = arith.addf %449, %452 : vector<1x256xf32>
    %454 = arith.addf %446, %453 : vector<1x256xf32>
    %c0_220 = arith.constant 0 : index
    %c80_221 = arith.constant 80 : index
    %455 = vector.load %arg11[%c0_220, %c80_221] : memref<1x352xf32, #tpu.memory_space<vmem>>, vector<1x256xf32>
    %456 = vector.broadcast %133 : f32 to vector<1x256xf32>
    %457 = arith.mulf %456, %455 : vector<1x256xf32>
    %c0_222 = arith.constant 0 : index
    %c80_223 = arith.constant 80 : index
    %458 = vector.load %arg18[%c0_222, %c80_223] : memref<1x352xf32, #tpu.memory_space<vmem>>, vector<1x256xf32>
    %459 = vector.broadcast %182 : f32 to vector<1x256xf32>
    %460 = arith.mulf %459, %458 : vector<1x256xf32>
    %461 = arith.addf %457, %460 : vector<1x256xf32>
    %462 = arith.addf %454, %461 : vector<1x256xf32>
    %c0_224 = arith.constant 0 : index
    %c96_225 = arith.constant 96 : index
    %463 = vector.load %arg11[%c0_224, %c96_225] : memref<1x352xf32, #tpu.memory_space<vmem>>, vector<1x256xf32>
    %464 = vector.broadcast %140 : f32 to vector<1x256xf32>
    %465 = arith.mulf %464, %463 : vector<1x256xf32>
    %c0_226 = arith.constant 0 : index
    %c96_227 = arith.constant 96 : index
    %466 = vector.load %arg18[%c0_226, %c96_227] : memref<1x352xf32, #tpu.memory_space<vmem>>, vector<1x256xf32>
    %467 = vector.broadcast %189 : f32 to vector<1x256xf32>
    %468 = arith.mulf %467, %466 : vector<1x256xf32>
    %469 = arith.addf %465, %468 : vector<1x256xf32>
    %470 = arith.addf %462, %469 : vector<1x256xf32>
    %c0_228 = arith.constant 0 : index
    %c0_229 = arith.constant 0 : index
    %471 = vector.load %arg12[%c0_228, %c0_229] : memref<1x352xf32, #tpu.memory_space<vmem>>, vector<1x256xf32>
    %472 = vector.broadcast %99 : f32 to vector<1x256xf32>
    %473 = arith.mulf %472, %471 : vector<1x256xf32>
    %c0_230 = arith.constant 0 : index
    %c0_231 = arith.constant 0 : index
    %474 = vector.load %arg19[%c0_230, %c0_231] : memref<1x352xf32, #tpu.memory_space<vmem>>, vector<1x256xf32>
    %475 = vector.broadcast %148 : f32 to vector<1x256xf32>
    %476 = arith.mulf %475, %474 : vector<1x256xf32>
    %477 = arith.addf %473, %476 : vector<1x256xf32>
    %478 = arith.addf %470, %477 : vector<1x256xf32>
    %c0_232 = arith.constant 0 : index
    %c16_233 = arith.constant 16 : index
    %479 = vector.load %arg12[%c0_232, %c16_233] : memref<1x352xf32, #tpu.memory_space<vmem>>, vector<1x256xf32>
    %480 = vector.broadcast %106 : f32 to vector<1x256xf32>
    %481 = arith.mulf %480, %479 : vector<1x256xf32>
    %c0_234 = arith.constant 0 : index
    %c16_235 = arith.constant 16 : index
    %482 = vector.load %arg19[%c0_234, %c16_235] : memref<1x352xf32, #tpu.memory_space<vmem>>, vector<1x256xf32>
    %483 = vector.broadcast %155 : f32 to vector<1x256xf32>
    %484 = arith.mulf %483, %482 : vector<1x256xf32>
    %485 = arith.addf %481, %484 : vector<1x256xf32>
    %486 = arith.addf %478, %485 : vector<1x256xf32>
    %c0_236 = arith.constant 0 : index
    %c32_237 = arith.constant 32 : index
    %487 = vector.load %arg12[%c0_236, %c32_237] : memref<1x352xf32, #tpu.memory_space<vmem>>, vector<1x256xf32>
    %488 = vector.broadcast %113 : f32 to vector<1x256xf32>
    %489 = arith.mulf %488, %487 : vector<1x256xf32>
    %c0_238 = arith.constant 0 : index
    %c32_239 = arith.constant 32 : index
    %490 = vector.load %arg19[%c0_238, %c32_239] : memref<1x352xf32, #tpu.memory_space<vmem>>, vector<1x256xf32>
    %491 = vector.broadcast %162 : f32 to vector<1x256xf32>
    %492 = arith.mulf %491, %490 : vector<1x256xf32>
    %493 = arith.addf %489, %492 : vector<1x256xf32>
    %494 = arith.addf %486, %493 : vector<1x256xf32>
    %c0_240 = arith.constant 0 : index
    %c48_241 = arith.constant 48 : index
    %495 = vector.load %arg12[%c0_240, %c48_241] : memref<1x352xf32, #tpu.memory_space<vmem>>, vector<1x256xf32>
    %496 = vector.broadcast %120 : f32 to vector<1x256xf32>
    %497 = arith.mulf %496, %495 : vector<1x256xf32>
    %c0_242 = arith.constant 0 : index
    %c48_243 = arith.constant 48 : index
    %498 = vector.load %arg19[%c0_242, %c48_243] : memref<1x352xf32, #tpu.memory_space<vmem>>, vector<1x256xf32>
    %499 = vector.broadcast %169 : f32 to vector<1x256xf32>
    %500 = arith.mulf %499, %498 : vector<1x256xf32>
    %501 = arith.addf %497, %500 : vector<1x256xf32>
    %502 = arith.addf %494, %501 : vector<1x256xf32>
    %c0_244 = arith.constant 0 : index
    %c64_245 = arith.constant 64 : index
    %503 = vector.load %arg12[%c0_244, %c64_245] : memref<1x352xf32, #tpu.memory_space<vmem>>, vector<1x256xf32>
    %504 = vector.broadcast %127 : f32 to vector<1x256xf32>
    %505 = arith.mulf %504, %503 : vector<1x256xf32>
    %c0_246 = arith.constant 0 : index
    %c64_247 = arith.constant 64 : index
    %506 = vector.load %arg19[%c0_246, %c64_247] : memref<1x352xf32, #tpu.memory_space<vmem>>, vector<1x256xf32>
    %507 = vector.broadcast %176 : f32 to vector<1x256xf32>
    %508 = arith.mulf %507, %506 : vector<1x256xf32>
    %509 = arith.addf %505, %508 : vector<1x256xf32>
    %510 = arith.addf %502, %509 : vector<1x256xf32>
    %c0_248 = arith.constant 0 : index
    %c80_249 = arith.constant 80 : index
    %511 = vector.load %arg12[%c0_248, %c80_249] : memref<1x352xf32, #tpu.memory_space<vmem>>, vector<1x256xf32>
    %512 = vector.broadcast %134 : f32 to vector<1x256xf32>
    %513 = arith.mulf %512, %511 : vector<1x256xf32>
    %c0_250 = arith.constant 0 : index
    %c80_251 = arith.constant 80 : index
    %514 = vector.load %arg19[%c0_250, %c80_251] : memref<1x352xf32, #tpu.memory_space<vmem>>, vector<1x256xf32>
    %515 = vector.broadcast %183 : f32 to vector<1x256xf32>
    %516 = arith.mulf %515, %514 : vector<1x256xf32>
    %517 = arith.addf %513, %516 : vector<1x256xf32>
    %518 = arith.addf %510, %517 : vector<1x256xf32>
    %c0_252 = arith.constant 0 : index
    %c96_253 = arith.constant 96 : index
    %519 = vector.load %arg12[%c0_252, %c96_253] : memref<1x352xf32, #tpu.memory_space<vmem>>, vector<1x256xf32>
    %520 = vector.broadcast %141 : f32 to vector<1x256xf32>
    %521 = arith.mulf %520, %519 : vector<1x256xf32>
    %c0_254 = arith.constant 0 : index
    %c96_255 = arith.constant 96 : index
    %522 = vector.load %arg19[%c0_254, %c96_255] : memref<1x352xf32, #tpu.memory_space<vmem>>, vector<1x256xf32>
    %523 = vector.broadcast %190 : f32 to vector<1x256xf32>
    %524 = arith.mulf %523, %522 : vector<1x256xf32>
    %525 = arith.addf %521, %524 : vector<1x256xf32>
    %526 = arith.addf %518, %525 : vector<1x256xf32>
    %c0_256 = arith.constant 0 : index
    %c0_257 = arith.constant 0 : index
    %527 = vector.load %arg13[%c0_256, %c0_257] : memref<1x352xf32, #tpu.memory_space<vmem>>, vector<1x256xf32>
    %528 = vector.broadcast %100 : f32 to vector<1x256xf32>
    %529 = arith.mulf %528, %527 : vector<1x256xf32>
    %c0_258 = arith.constant 0 : index
    %c0_259 = arith.constant 0 : index
    %530 = vector.load %arg20[%c0_258, %c0_259] : memref<1x352xf32, #tpu.memory_space<vmem>>, vector<1x256xf32>
    %531 = vector.broadcast %149 : f32 to vector<1x256xf32>
    %532 = arith.mulf %531, %530 : vector<1x256xf32>
    %533 = arith.addf %529, %532 : vector<1x256xf32>
    %534 = arith.addf %526, %533 : vector<1x256xf32>
    %c0_260 = arith.constant 0 : index
    %c16_261 = arith.constant 16 : index
    %535 = vector.load %arg13[%c0_260, %c16_261] : memref<1x352xf32, #tpu.memory_space<vmem>>, vector<1x256xf32>
    %536 = vector.broadcast %107 : f32 to vector<1x256xf32>
    %537 = arith.mulf %536, %535 : vector<1x256xf32>
    %c0_262 = arith.constant 0 : index
    %c16_263 = arith.constant 16 : index
    %538 = vector.load %arg20[%c0_262, %c16_263] : memref<1x352xf32, #tpu.memory_space<vmem>>, vector<1x256xf32>
    %539 = vector.broadcast %156 : f32 to vector<1x256xf32>
    %540 = arith.mulf %539, %538 : vector<1x256xf32>
    %541 = arith.addf %537, %540 : vector<1x256xf32>
    %542 = arith.addf %534, %541 : vector<1x256xf32>
    %c0_264 = arith.constant 0 : index
    %c32_265 = arith.constant 32 : index
    %543 = vector.load %arg13[%c0_264, %c32_265] : memref<1x352xf32, #tpu.memory_space<vmem>>, vector<1x256xf32>
    %544 = vector.broadcast %114 : f32 to vector<1x256xf32>
    %545 = arith.mulf %544, %543 : vector<1x256xf32>
    %c0_266 = arith.constant 0 : index
    %c32_267 = arith.constant 32 : index
    %546 = vector.load %arg20[%c0_266, %c32_267] : memref<1x352xf32, #tpu.memory_space<vmem>>, vector<1x256xf32>
    %547 = vector.broadcast %163 : f32 to vector<1x256xf32>
    %548 = arith.mulf %547, %546 : vector<1x256xf32>
    %549 = arith.addf %545, %548 : vector<1x256xf32>
    %550 = arith.addf %542, %549 : vector<1x256xf32>
    %c0_268 = arith.constant 0 : index
    %c48_269 = arith.constant 48 : index
    %551 = vector.load %arg13[%c0_268, %c48_269] : memref<1x352xf32, #tpu.memory_space<vmem>>, vector<1x256xf32>
    %552 = vector.broadcast %121 : f32 to vector<1x256xf32>
    %553 = arith.mulf %552, %551 : vector<1x256xf32>
    %c0_270 = arith.constant 0 : index
    %c48_271 = arith.constant 48 : index
    %554 = vector.load %arg20[%c0_270, %c48_271] : memref<1x352xf32, #tpu.memory_space<vmem>>, vector<1x256xf32>
    %555 = vector.broadcast %170 : f32 to vector<1x256xf32>
    %556 = arith.mulf %555, %554 : vector<1x256xf32>
    %557 = arith.addf %553, %556 : vector<1x256xf32>
    %558 = arith.addf %550, %557 : vector<1x256xf32>
    %c0_272 = arith.constant 0 : index
    %c64_273 = arith.constant 64 : index
    %559 = vector.load %arg13[%c0_272, %c64_273] : memref<1x352xf32, #tpu.memory_space<vmem>>, vector<1x256xf32>
    %560 = vector.broadcast %128 : f32 to vector<1x256xf32>
    %561 = arith.mulf %560, %559 : vector<1x256xf32>
    %c0_274 = arith.constant 0 : index
    %c64_275 = arith.constant 64 : index
    %562 = vector.load %arg20[%c0_274, %c64_275] : memref<1x352xf32, #tpu.memory_space<vmem>>, vector<1x256xf32>
    %563 = vector.broadcast %177 : f32 to vector<1x256xf32>
    %564 = arith.mulf %563, %562 : vector<1x256xf32>
    %565 = arith.addf %561, %564 : vector<1x256xf32>
    %566 = arith.addf %558, %565 : vector<1x256xf32>
    %c0_276 = arith.constant 0 : index
    %c80_277 = arith.constant 80 : index
    %567 = vector.load %arg13[%c0_276, %c80_277] : memref<1x352xf32, #tpu.memory_space<vmem>>, vector<1x256xf32>
    %568 = vector.broadcast %135 : f32 to vector<1x256xf32>
    %569 = arith.mulf %568, %567 : vector<1x256xf32>
    %c0_278 = arith.constant 0 : index
    %c80_279 = arith.constant 80 : index
    %570 = vector.load %arg20[%c0_278, %c80_279] : memref<1x352xf32, #tpu.memory_space<vmem>>, vector<1x256xf32>
    %571 = vector.broadcast %184 : f32 to vector<1x256xf32>
    %572 = arith.mulf %571, %570 : vector<1x256xf32>
    %573 = arith.addf %569, %572 : vector<1x256xf32>
    %574 = arith.addf %566, %573 : vector<1x256xf32>
    %c0_280 = arith.constant 0 : index
    %c96_281 = arith.constant 96 : index
    %575 = vector.load %arg13[%c0_280, %c96_281] : memref<1x352xf32, #tpu.memory_space<vmem>>, vector<1x256xf32>
    %576 = vector.broadcast %142 : f32 to vector<1x256xf32>
    %577 = arith.mulf %576, %575 : vector<1x256xf32>
    %c0_282 = arith.constant 0 : index
    %c96_283 = arith.constant 96 : index
    %578 = vector.load %arg20[%c0_282, %c96_283] : memref<1x352xf32, #tpu.memory_space<vmem>>, vector<1x256xf32>
    %579 = vector.broadcast %191 : f32 to vector<1x256xf32>
    %580 = arith.mulf %579, %578 : vector<1x256xf32>
    %581 = arith.addf %577, %580 : vector<1x256xf32>
    %582 = arith.addf %574, %581 : vector<1x256xf32>
    %c0_284 = arith.constant 0 : index
    %583 = memref.load %arg2[%c0_284] : memref<1xf32, #tpu.memory_space<smem>>
    %584 = vector.broadcast %583 : f32 to vector<1x256xf32>
    %585 = arith.addf %582, %584 : vector<1x256xf32>
    %586 = arith.negf %585 : vector<1x256xf32>
    %587 = math.exp %586 : vector<1x256xf32>
    %cst_285 = arith.constant 1.000000e+00 : f32
    %588 = vector.broadcast %cst_285 : f32 to vector<1x256xf32>
    %589 = arith.addf %588, %587 : vector<1x256xf32>
    %590 = arith.divf %588, %589 : vector<1x256xf32>
    %c0_286 = arith.constant 0 : index
    %c0_287 = arith.constant 0 : index
    %c0_288 = arith.constant 0 : index
    %591 = vector.load %arg3[%c0_286, %c0_287, %c0_288] : memref<1x4x256xf32, #tpu.memory_space<vmem>>, vector<1x4x256xf32>
    %592 = vector.shape_cast %591 : vector<1x4x256xf32> to vector<4x256xf32>
    %593 = vector.broadcast %590 : vector<1x256xf32> to vector<4x256xf32>
    %594 = arith.mulf %592, %593 : vector<4x256xf32>
    %c0_289 = arith.constant 0 : index
    %c0_290 = arith.constant 0 : index
    %c0_291 = arith.constant 0 : index
    %595 = vector.load %arg4[%c0_289, %c0_290, %c0_291] : memref<1x4x256xf32, #tpu.memory_space<vmem>>, vector<1x4x256xf32>
    %596 = vector.shape_cast %595 : vector<1x4x256xf32> to vector<4x256xf32>
    %597 = vector.shape_cast %594 : vector<4x256xf32> to vector<1x4x256xf32>
    tpu.vector_store %arg4[%c0_289, %c0_290, %c0_291], %597 {strides = array<i32>} : memref<1x4x256xf32, #tpu.memory_space<vmem>>, vector<1x4x256xf32>,
    return
  }
  func.func @transform_0(%arg0: i32, %arg1: memref<98xf32, #tpu.memory_space<smem>>, %arg2: memref<1xf32, #tpu.memory_space<smem>>) -> (i32, i32, i32) {
    %c0_i32 = arith.constant 0 : i32
    %c0_i32_0 = arith.constant 0 : i32
    %c0_i32_1 = arith.constant 0 : i32
    return %arg0, %c0_i32, %c0_i32_0 : i32, i32, i32
  }
  func.func @transform_1(%arg0: i32, %arg1: memref<98xf32, #tpu.memory_space<smem>>, %arg2: memref<1xf32, #tpu.memory_space<smem>>) -> (i32, i32, i32) {
    %c0_i32 = arith.constant 0 : i32
    %c0_i32_0 = arith.constant 0 : i32
    %c0_i32_1 = arith.constant 0 : i32
    return %arg0, %c0_i32, %c0_i32_0 : i32, i32, i32
  }
}

</mosaic_0001>

<bundles_post_ra>
// kernel: tpu_custom_call.1
= control target key start
LH: loop header
LB: loop body
LE: loop exit
PB: predicated region body
PF: predicated region fallthrough
CT: control target
= control target key end

     0   :  { %s2933_s0 = inlined_call_operand.vmem [shape: f32[98], index: 0, kind: input, shape index: {}]   ;;  %s2934_s1 = inlined_call_operand.<no memory space> [shape: f32[1], index: 1, kind: input, shape index: {}]   ;;  %s2935_s2 = inlined_call_operand.hbm [shape: f32[2,4,256], index: 2, kind: input, shape index: {}]   ;;  %s2936_s3 = inlined_call_operand.hbm [shape: f32[2,4,256], index: 3, kind: output, shape index: {}]  }
   0x1   :  { %2957 = sst [smem:[#allocation34_spill]] %s2935_s2  ;;  %s8_s14 = sshll.u32 %s2933_s0, 4  ;;  %s9_s14 = int_to_ptr.vmem [resolvable:$true] %s8_s14 }
   0x2   :  { %12 = sst [smem:[#allocation20]] %s2934_s1  ;;  %s1939_s17 = scalar_lea.vmem %s9_s14, 16 }
   0x3   :  { %p1940_p0 = scmp.ne.s32.totalorder %s9_s14, %s1939_s17  ;;  %p1944_p1 = scmp.lt.s32.totalorder %s9_s14, %s9_s14 }
   0x4   :  { %p1945_p2 = scmp.lt.s32.totalorder %s1939_s17, %s1939_s17 }
   0x6   :  { %p1946_p3 = por %p1945_p2, %p1944_p1 }
   0x8   :  { %p1947_p4 = pnand %p1946_p3, %p1940_p0 }
   0xa   :  { %1950 = shalt.err (!%p1947_p4)  }
   0xb   :  { %s2051_s18 = smov [#allocation19]  }
   0xc   :  { %11 = dma.vmem_to_smem %s9_s14, 16, %s2051_s18, [#allocation18] }
   0xd   :  { %2025 = dma.done.wait [#allocation18], 16 }
   0xe   :  { %2026 = vsyncadd [#allocation18], 4294967280 }
   0xf   :  { %14 = sfence }
  0x10   :  { %15 = vsyncpa [#allocation22], 0 }
  0x11   :  { %17 = vsyncpa [#allocation22 + $0x1], 0 }
  0x12   :  { %18 = vsyncpa [#allocation23], 0 }
  0x13   :  { %20 = vsyncpa [#allocation23 + $0x1], 0  ;;  %s2095_s0 = smov 0   ;;  %s2097_s1 = smov 0  }
  0x14   :  { %s2099_s19 = smov 0   ;;  %s2101_s20 = smov 0  }
  0x15 LB: > { %2958 = sst [smem:[#allocation28_spill]] %s2041_s1  ;;  %s2116_s21 = sadd.s32 4294967295, %s2049_s20   ;;  %s2049_s20 = sphi %s2101_s20, %s2990_s20   ;;  %s2045_s19 = sphi %s2099_s19, %s2993_s19   ;;  %s2041_s1 = sphi %s2097_s1, %s2992_s1   ;;  %s2037_s0 = sphi %s2095_s0, %s2991_s0  }
  0x16   : > { %2959 = sst [smem:[#allocation29_spill]] %s2045_s19  ;;  %s1758_s22 = sadd.s32 4294967294, %s2049_s20  }
  0x17   : > { %2960 = sst [smem:[#allocation30_spill]] %s2049_s20  ;;  %s2120_s23 = sadd.s32 1, %s2049_s20  }
  0x18   : > { %2961 = sst [smem:[#allocation31_spill]] %s2120_s23  ;;  %s33_s24 = sadd.s32 1, %s2045_s19 }
  0x19   : > { %s30_s25 = ssub.s32 %s2049_s20, %s2120_s23  ;;  %p40_p5 = scmp.ne.s32.totalorder %s2045_s19, %s2041_s1 }
  0x1a   : > { %p31_p6 = scmp.eq.s32.totalorder %s30_s25, 0  ;;  %p41_p7 = scmp.eq.s32.totalorder %s2049_s20, 0 }
  0x1b   : > { %p46_p8 = scmp.ne.s32.totalorder %s2041_s1, %s2037_s0  ;;  %p47_p9 = scmp.eq.s32.totalorder %s2116_s21, 0 }
  0x1c   : > { %s2132_s26 = scalar_select %p31_p6, %s2045_s19, %s33_s24  }
  0x1d   : > { %p2134_p10 = por %p41_p7, %p40_p5  ;;  %p2138_p11 = por %p47_p9, %p46_p8 }
  0x1e   : > { %2962 = sst [smem:[#allocation32_spill]] %s2132_s26  ;;  %p70_p12 = scmp.eq.s32.totalorder %s2116_s21, 1 }
  0x1f   : > { %p76_p13 = scmp.eq.s32.totalorder %s1758_s22, 1  ;;  %p1884_p1 = scmp.lt.s32.totalorder %s2049_s20, 2 }
  0x20   : > { %p2145_p2 = por %p70_p12, %p40_p5  ;;  %s96_s4 = sand.u32 1, %s2045_s19  }
  0x21   : > { %p2149_p3 = por %p76_p13, %p46_p8  ;;  %s1870_s5 = sshll.u32 %s2049_s20, 7 }
  0x22   : > { %s2965_s29 = scalar_select %p2145_p2, 1, 0 }
  0x23   : > { %s2966_s30 = scalar_select %p2149_p3, 1, 0 }
  0x24   : > { %s1761_s6 = sshll.u32 %s96_s4, 3  ;;  %s2968_s2 = sld [smem:[#allocation34_spill]] }
  0x25   : > { %2967 = sst [smem:[#allocation33_spill]] %s2966_s30  ;;  %s100_s10 = scalar_lea.vmem [#allocation21], %s1761_s6 }
  0x26   : > { %s108_s11 = sshll.u32 %s100_s10, 4  ;;  %p2162_p4 = pnand %p1884_p1, %p2134_p10  ;;  %s2166_s11 = int_to_ptr.vmem [resolvable:$true] %s108_s11 }
  0x27   : > { %s97_s13 = scalar_lea.sflag [#allocation22], %s96_s4 }
  0x28   : > { %p1953_p8 = pneg %p2162_p4 }
  0x2a   : > { %s2158_s9 = scalar_lea.hbm %s2968_s2, %s1870_s5  ;;  %s1956_s17 = scalar_lea.hbm %s2968_s2, 256 }
  0x2b   : > { %s1951_s14 = scalar_lea.hbm %s2158_s9, 128  ;;  %p1957_p10 = scmp.lt.u32.totalorder %s2158_s9, %s2968_s2 }
  0x2c   : > { %p1952_p7 = scmp.ne.s32.totalorder %s2158_s9, %s1951_s14  ;;  %p1958_p13 = scmp.lt.u32.totalorder %s1956_s17, %s1951_s14 }
  0x2d   : > { %p1960_p0 = scmp.lt.u32.totalorder %s1951_s14, %s2158_s9 }
  0x2e   : > { %p1954_p9 = pnand %p1953_p8, %p1952_p7  ;;  %p1959_p1 = por %p1958_p13, %p1957_p10 }
  0x30   : > { %p1955_p12 = pneg %p1954_p9  ;;  %p1961_p5 = por %p1960_p0, %p1959_p1 }
  0x32   : > { %p1962_p6 = pnand %p1961_p5, %p1955_p12 }
  0x34   : > { %1965 = shalt.err (!%p1962_p6)
}
  0x35   : > { %s1966_s24 = scalar_lea.vmem %s2166_s11, 128  ;;  %s2052_s25 = smov [#allocation21]  }
  0x36   : > { %p1967_p7 = scmp.ne.s32.totalorder %s2166_s11, %s1966_s24  ;;  %s1971_s27 = sshll.u32 %s2052_s25, 4  ;;  %s1972_s27 = int_to_ptr.vmem [resolvable:$false] %s1971_s27 }
  0x37   : > { %s1973_s4 = scalar_lea.vmem %s1972_s27, 256  ;;  %p1974_p2 = scmp.lt.s32.totalorder %s2166_s11, %s1972_s27 }
  0x38   : > { %p1969_p9 = pnand %p1967_p7, %p1953_p8  ;;  %p1975_p10 = scmp.lt.s32.totalorder %s1973_s4, %s1966_s24 }
  0x3a   : > { %p1970_p3 = pneg %p1969_p9  ;;  %p1976_p13 = por %p1975_p10, %p1974_p2 }
  0x3c   : > { %p1977_p0 = pnand %p1976_p13, %p1970_p3 }
  0x3e   : > { %1980 = shalt.err (!%p1977_p0)
}
  0x3f   : > { %1879 = dma.hbm_to_vmem [thread:$0]  (!%p2162_p4), %s2158_s9, 128, %s2166_s11, %s97_s13  }
  0x40   : > { %p2970_p5 = scmp.lt.s32.totalorder %s2049_s20, 3  ;;  %p2971_p6 = scmp.ge.s32.totalorder %s2049_s20, 1 }
  0x42   : > { %p114_p8 = pnand %p2971_p6, %p2970_p5 }
  0x43   : > { %s2200_s5 = sand.u32 (!%p114_p8), 1, %s2041_s1  }
  0x44   : > { %117 = sbr.rel (%p114_p8) target bundleno = 625 (0x271), region = 24  ;;  %s2938_s6 = sshll.u32 (!%p114_p8), %s2200_s5, 3 }
  0x45   : > { %s120_s7 = scalar_lea.sflag (!%p114_p8), [#allocation22], %s2200_s5  ;;  %s2206_s8 = scalar_lea.vmem (!%p114_p8), [#allocation21], %s2938_s6 }
  0x4b   : > { %2028 = dma.done.wait (%p2138_p11), %s120_s7, 128  }
  0x4c   : > { %2030 = vsyncadd (%p2138_p11), %s120_s7, 4294967168  ;;  %v142_v0 = vlaneseq  ;;  %v2053_v3 = vmov 0.0   ;;  %vm157_vm6 = vcmask 1043456   ;;  %v153_v4 = vld [vmem:[%s2206_s8] sm:$0xff]  ;;  %v2054_v16 = vmov 1966171168  }
  0x4d   : > { %v155_v5 = vcombine.high %v153_v4, %v153_v4  ;;  %v158_v6 = vsel %vm157_vm6, %v153_v4, -inf  ;;  %v198_v7 = vsel %vm157_vm6, %v153_v4, 0.0  ;;  %v176_v17 = vunpack.c.l.s4 %v2054_v16  ;;  %s2055_s28 = smov 51   ;;  %s2056_s9 = smov 127  }
  0x4e   : > { %vm144_vm0 = vcmp.lt.s32.totalorder %v142_v0, 51  ;;  %vm2214_vm1 = vcmp.ge.s32.totalorder %v142_v0, 51  ;;  %vm148_vm2 = vcmp.lt.s32.totalorder %v142_v0, 102  ;;  %vm2222_vm4 = vcmp.lt.s32.totalorder %v142_v0, 307  ;;  %s2057_s10 = smov 126   ;;  %s2058_s11 = smov 125  }
  0x4f   : > { %vm149_vm3 = vmand %vm2214_vm1, %vm148_vm2  ;;  %146 = vst.msk [vmem:[#allocation2] sm:$0x1] %vm144_vm0, %v2053_v3  ;;  %v159_v8 = vrot.slane %v158_v6, 4  ;;  %v199_v9 = vrot.slane %v198_v7, 4  ;;  %v165_v10 = vsel %vm157_vm6, %v155_v5, -inf  ;;  %v205_v11 = vsel %vm157_vm6, %v155_v5, 0.0 }
  0x50   : > { %151 = vst.msk [vmem:[#allocation3] sm:$0x1] %vm144_vm0, %v2053_v3  ;;  %vm196_vm5 = vmand %vm2214_vm1, %vm2222_vm4  ;;  %v166_v13 = vrot.slane %v165_v10, 4  ;;  %v206_v15 = vrot.slane %v205_v11, 4  ;;  %v177_v26 = vunpack.c.0.s8 %v176_v17  ;;  %v179_v27 = vshrl.u32 %v142_v0, 7  ;;  %s2059_s12 = smov 124  }
  0x51   : > { %150 = vst.msk [vmem:[#allocation2 + $0x2] sm:$0x1] %vm149_vm3, %v2053_v3  ;;  %152 = vst.msk [vmem:[#allocation3 + $0x2] sm:$0x1] %vm149_vm3, %v2053_v3  ;;  %v160_v12 = vmax.f32 %v158_v6, %v159_v8  ;;  %v200_v14 = vadd.f32 %v199_v9, %v198_v7  ;;  %v236_v45 = vand.u32 127, %v142_v0  ;;  %vm192_vm7 = vcmask 416768  }
  0x52   : > { %v167_v19 = vmax.f32 %v165_v10, %v166_v13  ;;  %v207_v21 = vadd.f32 %v206_v15, %v205_v11  ;;  %v2232_v37 = vsub.s32 %v177_v26, %v179_v27  ;;  %v2250_v57 = vsub.s32 0, %v179_v27  ;;  %s2060_s13 = smov 123   ;;  %s1822_s14 = sld [smem:[#allocation19 + $0x38]] }
  0x53   : > { %v161_v18 = vrot.slane %v160_v12, 2  ;;  %v201_v20 = vrot.slane %v200_v14, 2  ;;  %v237_v48 = vadd.s32 128, %v236_v45  ;;  %v238_v49 = vadd.s32 256, %v236_v45  ;;  %s1773_s15 = sld [smem:[#allocation19 + $0x7]]  ;;  %s1836_s16 = sld [smem:[#allocation19 + $0x46]] }
  0x54   : > { %v168_v23 = vrot.slane %v167_v19, 2  ;;  %v208_v25 = vrot.slane %v207_v21, 2  ;;  %v2244_v53 = vand.u32 15, %v236_v45  ;;  %v2252_v58 = vsub.s32 1, %v179_v27  ;;  %s2061_s17 = smov 122   ;;  %s2328_s18 = sld [smem:[#allocation19 + $0x15]] }
  0x55   : > { %v162_v22 = vmax.f32 %v160_v12, %v161_v18  ;;  %v202_v24 = vadd.f32 %v201_v20, %v200_v14  ;;  %v2246_v54 = vand.u32 15, %v237_v48  ;;  %v2248_v55 = vand.u32 15, %v238_v49  ;;  %s2332_s22 = sld [smem:[#allocation19 + $0x54]]  ;;  %s2335_s24 = sld [smem:[#allocation19 + $0x3f]] }
  0x56   : > { %v169_v29 = vmax.f32 %v167_v19, %v168_v23  ;;  %v209_v31 = vadd.f32 %v208_v25, %v207_v21  ;;  %v2254_v59 = vsub.s32 2, %v179_v27  ;;  %vm277_vm8 = vcmp.ge.s32.totalorder %v2244_v53, 3  ;;  %s2337_s25 = sld [smem:[#allocation19 + $0x23]]  ;;  %s2340_s27 = sld [smem:[#allocation19 + $0xe]] }
  0x57   : > { %v163_v28 = vrot.slane %v162_v22, 1  ;;  %v203_v30 = vrot.slane %v202_v24, 1  ;;  %vm278_vm9 = vcmp.ge.s32.totalorder %v2246_v54, 3  ;;  %vm279_vm10 = vcmp.ge.s32.totalorder %v2248_v55, 3  ;;  %s1843_s4 = sld [smem:[#allocation19 + $0x4d]]  ;;  %s2346_s7 = sld [smem:[#allocation19 + $0x1c]] }
  0x58   : > { %v170_v33 = vrot.slane %v169_v29, 1  ;;  %v210_v35 = vrot.slane %v209_v31, 1  ;;  %vm2295_vm11 = vcmp.lt.s32.totalorder %v142_v0, 352  ;;  %vm400_vm12 = vcmask 1039360   ;;  %s2422_s6 = sld [smem:[#allocation19 + $0x55]]  ;;  %s2443_s2 = sld [smem:[#allocation19 + $0x2c]] }
  0x59   : > { %v164_v32 = vmax.f32 %v162_v22, %v163_v28  ;;  %v204_v34 = vadd.f32 %v203_v30, %v202_v24  ;;  %vm380_vm13 = vcmp.ge.s32.totalorder %v2248_v55, 2  ;;  %vm378_vm14 = vcmp.ge.s32.totalorder %v2244_v53, 2  ;;  %s2484_s26 = sld [smem:[#allocation19 + $0x3b]]  ;;  %s2517_s19 = sld [smem:[#allocation19 + $0x5d]] }
  0x5a   : > { %v171_v36 = vmax.f32 %v169_v29, %v170_v33  ;;  %v211_v38 = vadd.f32 %v210_v35, %v209_v31  ;;  %vm379_vm15 = vcmp.ge.s32.totalorder %v2246_v54, 2  ;;  %vm496_vm0 = vcmp.ge.s32.totalorder %v2248_v55, 1  ;;  %s2978_s1 = smov 96   ;;  %s2979_s23 = smov 112  }
  0x5b   : > { %vm516_vm1 = vcmask 1031168   ;;  %vm494_vm2 = vcmp.ge.s32.totalorder %v2244_v53, 1  ;;  %vm495_vm3 = vcmp.ge.s32.totalorder %v2246_v54, 1  ;;  %vm614_vm4 = vcmask 1022976   ;;  %s2981_s20 = smov 80   ;;  %s2554_s30 = sld [smem:[#allocation19 + $0x50]] }
  0x5c   : > { %v174_v39 = vcombine.low %v164_v32, %v171_v36  ;;  %v214_v40 = vcombine.low %v204_v34, %v211_v38  ;;  %vm627_vm6 = vcmp.lt.s32.totalorder %v2244_v53, 15  ;;  %p2985_p2 = scmp.ne.s32.totalorder %s2965_s29, 0 }
  0x5e   : > { %v181_v41 = vrot.slane %v174_v39, %v2232_v37  ;;  %v221_v42 = vrot.slane %v214_v40, %v2232_v37 }
  0x60   : > { %v188_v43 = vrot.slane %v181_v41, %v2232_v37  ;;  %v228_v44 = vrot.slane %v221_v42, %v2232_v37 }
  0x62   : > { %189 = vrot.lane.b32.xlu0 %v188_v43, %s2055_s28 }
  0x66   : > { %229 = vrot.lane.b32.xlu0 %v228_v44, %s2055_s28  ;;  %s2947_s28 = smov 112  }
  0xd4   : > { %v190_v46 = vpop.permute.xlu0 %189 }
  0xd5   : > { %v191_v47 = vrot.slane %v190_v46, 7 }
  0xd7   : > { %v193_v50 = vsel %vm192_vm7, %v191_v47, %v190_v46 }
  0xd8   : > { %197 = vst.msk [vmem:[#allocation2] sm:$0x7] %vm196_vm5, %v193_v50  ;;  %v230_v51 = vpop.permute.xlu0 %229 }
  0xd9   : > { %v231_v52 = vrot.slane %v230_v51, 7 }
  0xdb   : > { %v232_v56 = vsel %vm192_vm7, %v231_v52, %v230_v51  ;;  %vm628_vm7 = vcmp.lt.s32.totalorder %v2246_v54, 15 }
  0xdc   : > { %234 = vst.msk [vmem:[#allocation3] sm:$0x7] %vm196_vm5, %v232_v56  ;;  %vm629_vm5 = vcmp.lt.s32.totalorder %v2248_v55, 15 }
  0xdf   : > { %v275_v60 = vld [vmem:[#allocation2] sm:$0x7] }
  0xe0   : > { %v376_v61 = vld [vmem:[#allocation2] sm:$0x7]  ;;  %v284_v62 = vrot.slane %v275_v60, %v2250_v57  ;;  %v288_v63 = vrot.slane %v275_v60, %v2252_v58  ;;  %v292_v3 = vrot.slane %v275_v60, %v2254_v59 }
  0xe1   : > { %v393_v1 = vrot.slane %v376_v61, %v2254_v59  ;;  %v385_v2 = vrot.slane %v376_v61, %v2250_v57  ;;  %v389_v16 = vrot.slane %v376_v61, %v2252_v58  ;;  %v492_v17 = vld [vmem:[#allocation2] sm:$0x7] }
  0xe2   : > { %v296_v4 = vsel %vm277_vm8, %v284_v62, 0.0  ;;  %v297_v5 = vsel %vm278_vm9, %v288_v63, 0.0  ;;  %v298_v6 = vsel %vm279_vm10, %v292_v3, 0.0  ;;  %v501_v24 = vrot.slane %v492_v17, %v2250_v57  ;;  %v608_v35 = vld [vmem:[#allocation2] sm:$0x7] }
  0xe3   : > { %398 = vrot.lane.b32.xlu0 %v393_v1, %s2056_s9  ;;  %v321_v7 = vcombine.low %v296_v4, %v297_v5  ;;  %v276_v8 = vld [vmem:[#allocation3] sm:$0x7]  ;;  %394 = vrot.lane.b32.xlu1 %v385_v2, %s2056_s9  ;;  %v335_v15 = vrot.slane %v298_v6, %v2232_v37  ;;  %v509_v30 = vrot.slane %v492_v17, %v2254_v59  ;;  %v625_v38 = vld [vmem:[#allocation2] sm:$0x7]  ;;  %v1082_v4 = vstv %s1822_s14  ;;  %s2945_s14 = smov 64  }
  0xe4   : > { %v377_v9 = vld [vmem:[#allocation3] sm:$0x7]  ;;  %v303_v10 = vrot.slane %v276_v8, %v2250_v57  ;;  %v307_v11 = vrot.slane %v276_v8, %v2252_v58  ;;  %v311_v12 = vrot.slane %v276_v8, %v2254_v59  ;;  %v505_v34 = vrot.slane %v492_v17, %v2252_v58  ;;  %v741_v46 = vld [vmem:[#allocation2] sm:$0x7] }
  0xe5   : > { %v417_v13 = vrot.slane %v377_v9, %v2252_v58  ;;  %v328_v14 = vrot.slane %v321_v7, %v2232_v37  ;;  %v413_v28 = vrot.slane %v377_v9, %v2250_v57  ;;  %v421_v31 = vrot.slane %v377_v9, %v2254_v59  ;;  %v493_v32 = vld [vmem:[#allocation3] sm:$0x7]  ;;  %v857_v60 = vld [vmem:[#allocation2] sm:$0x7] }
  0xe6   : > { %v315_v18 = vsel %vm277_vm8, %v303_v10, 0.0  ;;  %v316_v19 = vsel %vm278_vm9, %v307_v11, 0.0  ;;  %v317_v20 = vsel %vm279_vm10, %v311_v12, 0.0  ;;  %v533_v33 = vrot.slane %v493_v32, %v2252_v58  ;;  %v626_v42 = vld [vmem:[#allocation3] sm:$0x7] }
  0xe7   : > { %424 = vrot.lane.b32.xlu0 %v417_v13, %s2056_s9  ;;  %v336_v21 = vcombine.low %v328_v14, %v335_v15  ;;  %v351_v22 = vcombine.low %v315_v18, %v316_v19  ;;  %v365_v23 = vrot.slane %v317_v20, %v2232_v37  ;;  %396 = vrot.lane.b32.xlu1 %v389_v16, %s2056_s9  ;;  %v609_v43 = vld [vmem:[#allocation3] sm:$0x7]  ;;  %v1079_v6 = vstv %s1773_s15  ;;  %s2941_s15 = smov 32  }
  0xe8   : > { %v529_v36 = vrot.slane %v493_v32, %v2250_v57  ;;  %v634_v39 = vrot.slane %v625_v38, %v2250_v57  ;;  %v537_v40 = vrot.slane %v493_v32, %v2254_v59  ;;  %v642_v41 = vrot.slane %v625_v38, %v2254_v59  ;;  %v742_v51 = vld [vmem:[#allocation3] sm:$0x7] }
  0xe9   : > { %v343_v26 = vrot.slane %v336_v21, %v2232_v37  ;;  %v358_v27 = vrot.slane %v351_v22, %v2232_v37  ;;  %v666_v44 = vrot.slane %v626_v42, %v2252_v58  ;;  %v638_v45 = vrot.slane %v625_v38, %v2252_v58  ;;  %v858_v1 = vld [vmem:[#allocation3] sm:$0x7] }
  0xea   : > { %v750_v47 = vrot.slane %v741_v46, %v2250_v57  ;;  %v662_v48 = vrot.slane %v626_v42, %v2250_v57  ;;  %v758_v49 = vrot.slane %v741_v46, %v2254_v59  ;;  %v670_v50 = vrot.slane %v626_v42, %v2254_v59 }
  0xeb   : > { %510 = vrot.lane.b32.xlu0 %v501_v24, %s2057_s10  ;;  %v366_v29 = vcombine.low %v358_v27, %v365_v23  ;;  %422 = vrot.lane.b32.xlu1 %v413_v28, %s2056_s9  ;;  %347 = vst.msk [vmem:[#allocation4] sm:$0x7] %vm2295_vm11, %v343_v26  ;;  %v782_v52 = vrot.slane %v742_v51, %v2252_v58  ;;  %v1108_v10 = vstv %s1836_s16  ;;  %v1106_v12 = vstv %s2328_s18  ;;  %s2377_s16 = sld [smem:[#allocation19 + $0xf]]  ;;  %s2384_s18 = sld [smem:[#allocation19 + $0x1d]] }
  0xec   : > { %v754_v56 = vrot.slane %v741_v46, %v2252_v58  ;;  %v866_v61 = vrot.slane %v857_v60, %v2250_v57  ;;  %v778_v62 = vrot.slane %v742_v51, %v2250_v57  ;;  %v874_v63 = vrot.slane %v857_v60, %v2254_v59 }
  0xed   : > { %v373_v0 = vrot.slane %v366_v29, %v2232_v37  ;;  %v786_v3 = vrot.slane %v742_v51, %v2254_v59  ;;  %v898_v7 = vrot.slane %v858_v1, %v2252_v58  ;;  %v870_v9 = vrot.slane %v857_v60, %v2252_v58 }
  0xee   : > { %v894_v15 = vrot.slane %v858_v1, %v2250_v57  ;;  %v1134_v16 = vstv %s2332_s22  ;;  %v1095_v18 = vstv %s2335_s24  ;;  %v1132_v19 = vstv %s2337_s25  ;;  %s2392_s22 = sld [smem:[#allocation19 + $0x16]]  ;;  %s2398_s24 = sld [smem:[#allocation19 + $0x2b]] }
  0xef   : > { %514 = vrot.lane.b32.xlu0 %v509_v30, %s2057_s10  ;;  %426 = vrot.lane.b32.xlu1 %v421_v31, %s2056_s9  ;;  %375 = vst.msk [vmem:[#allocation11] sm:$0x7] %vm2295_vm11, %v373_v0  ;;  %s1857_s9 = sld [smem:[#allocation19 + $0x5b]]  ;;  %v1093_v21 = vstv %s2340_s27  ;;  %v902_v23 = vrot.slane %v858_v1, %v2254_v59  ;;  %v1121_v27 = vstv %s1843_s4  ;;  %s2400_s25 = sld [smem:[#allocation19 + $0x24]]  ;;  %vm649_vm8 = vcmask 1014784  }
  0xf0   : > { %v1119_v30 = vstv %s2346_s7  ;;  %s2402_s27 = sld [smem:[#allocation19 + $0x40]]  ;;  %s2404_s4 = sld [smem:[#allocation19 + $0x39]]  ;;  %vm745_vm9 = vcmp.lt.s32.totalorder %v2248_v55, 14  ;;  %vm743_vm10 = vcmp.lt.s32.totalorder %v2244_v53, 14 }
  0xf1   : > { %s2410_s7 = sld [smem:[#allocation19 + $0x4e]] }
  0xf2   : > { %v1078_v5 = vld [vmem:[#allocation4] sm:$0x7] }
  0xf3   : > { %540 = vrot.lane.b32.xlu0 %v533_v33, %s2057_s10  ;;  %512 = vrot.lane.b32.xlu1 %v505_v34, %s2057_s10  ;;  %v1080_v11 = vmul.f32 %v1079_v6, %v1078_v5  ;;  %v1107_v17 = vmul.f32 %v1106_v12, %v1078_v5  ;;  %v1133_v26 = vmul.f32 %v1132_v19, %v1078_v5 }
  0xf4   : > { %v1094_v28 = vmul.f32 %v1093_v21, %v1078_v5  ;;  %v1120_v59 = vmul.f32 %v1119_v30, %v1078_v5 }
  0xf5   : > { %v1147_v32 = vstv %s1857_s9  ;;  %s2412_s9 = sld [smem:[#allocation19 + $0x47]] }
  0xf6   : > { %v1081_v2 = vld [vmem:[#allocation11] sm:$0x7] }
  0xf7   : > { %611 = vrot.lane.b32.xlu0 %v608_v35, %s2058_s11  ;;  %538 = vrot.lane.b32.xlu1 %v529_v36, %s2057_s10  ;;  %v1083_v8 = vmul.f32 %v1082_v4, %v1081_v2  ;;  %v1109_v14 = vmul.f32 %v1108_v10, %v1081_v2  ;;  %v1135_v22 = vmul.f32 %v1134_v16, %v1081_v2 }
  0xf8   : > { %v1096_v24 = vmul.f32 %v1095_v18, %v1081_v2  ;;  %v1122_v31 = vmul.f32 %v1121_v27, %v1081_v2  ;;  %v1148_v35 = vmul.f32 %v1147_v32, %v1081_v2  ;;  %v1228_v32 = vstv %s2398_s24  ;;  %s2556_s24 = sld [smem:[#allocation19 + $0x49]] }
  0xf9   : > { %v1084_v13 = vadd.f32 %v1083_v8, %v1080_v11  ;;  %v1110_v20 = vadd.f32 %v1109_v14, %v1107_v17  ;;  %v1136_v29 = vadd.f32 %v1135_v22, %v1133_v26 }
  0xfa   : > { %v1097_v0 = vadd.f32 %v1096_v24, %v1094_v28  ;;  %v1123_v34 = vadd.f32 %v1122_v31, %v1120_v59  ;;  %v1180_v24 = vstv %s2377_s16  ;;  %v1192_v31 = vstv %s2392_s22  ;;  %s2455_s16 = sld [smem:[#allocation19 + $0x25]]  ;;  %s2543_s22 = sld [smem:[#allocation19 + $0x56]] }
  0xfb   : > { %643 = vrot.lane.b32.xlu0 %v634_v39, %s2059_s12  ;;  %542 = vrot.lane.b32.xlu1 %v537_v40, %s2057_s10  ;;  %s1808_s10 = sld [smem:[#allocation19 + $0x2a]] }
  0xff   : > { %647 = vrot.lane.b32.xlu0 %v642_v41, %s2059_s12  ;;  %619 = vrot.lane.b32.xlu1 %v609_v43, %s2058_s11  ;;  %s2943_s11 = smov 80  }
 0x101   : > { %v1145_v33 = vstv %s1808_s10  ;;  %s2420_s10 = sld [smem:[#allocation19 + $0x5c]] }
 0x102   : > { %v1146_v36 = vmul.f32 %v1145_v33, %v1078_v5 }
 0x103   : > { %673 = vrot.lane.b32.xlu0 %v666_v44, %s2059_s12  ;;  %645 = vrot.lane.b32.xlu1 %v638_v45, %s2059_s12 }
 0x104   : > { %v1149_v38 = vadd.f32 %v1148_v35, %v1146_v36  ;;  %v1216_v35 = vstv %s2400_s25  ;;  %s2567_s25 = sld [smem:[#allocation19 + $0x5e]] }
 0x107   : > { %759 = vrot.lane.b32.xlu0 %v750_v47, %s2060_s13  ;;  %671 = vrot.lane.b32.xlu1 %v662_v48, %s2059_s12 }
 0x10b   : > { %763 = vrot.lane.b32.xlu0 %v758_v49, %s2060_s13  ;;  %675 = vrot.lane.b32.xlu1 %v670_v50, %s2059_s12  ;;  %s2939_s12 = smov 48  }
 0x10f   : > { %789 = vrot.lane.b32.xlu0 %v782_v52, %s2060_s13  ;;  %761 = vrot.lane.b32.xlu1 %v754_v56, %s2060_s13 }
 0x113   : > { %875 = vrot.lane.b32.xlu0 %v866_v61, %s2061_s17  ;;  %787 = vrot.lane.b32.xlu1 %v778_v62, %s2060_s13 }
 0x117   : > { %879 = vrot.lane.b32.xlu0 %v874_v63, %s2061_s17  ;;  %791 = vrot.lane.b32.xlu1 %v786_v3, %s2060_s13  ;;  %s2949_s13 = smov 96  }
 0x11b   : > { %905 = vrot.lane.b32.xlu0 %v898_v7, %s2061_s17  ;;  %877 = vrot.lane.b32.xlu1 %v870_v9, %s2061_s17 }
 0x11f   : > { %1086 = vrot.lane.b32.xlu0 %v1084_v13, %s2947_s28  ;;  %903 = vrot.lane.b32.xlu1 %v894_v15, %s2061_s17  ;;  %s2435_s28 = sld [smem:[#allocation19 + $0x1e]] }
 0x123   : > { %1112 = vrot.lane.b32.xlu0 %v1110_v20, %s2943_s11  ;;  %907 = vrot.lane.b32.xlu1 %v902_v23, %s2061_s17  ;;  %s2382_s17 = sld [smem:[#allocation19 + $0x8]]  ;;  %s2428_s11 = sld [smem:[#allocation19 + $0xa]] }
 0x127   : > { %1138 = vrot.lane.b32.xlu0 %v1136_v29, %s2939_s12  ;;  %1099 = vrot.lane.b32.xlu1 %v1097_v0, %s2949_s13  ;;  %s2424_s12 = sld [smem:[#allocation19 + $0x11]]  ;;  %s2441_s13 = sld [smem:[#allocation19 + $0x17]]  ;;  %v1204_v0 = vstv %s2384_s18 }
 0x128   : > { %s2980_s18 = smov 64  }
 0x129   : > { %v1167_v26 = vstv %s2382_s17  ;;  %s2475_s17 = sld [smem:[#allocation19 + $0x1f]] }
 0x12b   : > { %1125 = vrot.lane.b32.xlu1 %v1123_v34, %s2945_s14  ;;  %s2433_s14 = sld [smem:[#allocation19 + $0x9]]  ;;  %v1182_v34 = vstv %s2402_s27  ;;  %s2477_s27 = sld [smem:[#allocation19 + $0x18]] }
 0x12f   : > { %1151 = vrot.lane.b32.xlu1 %v1149_v38, %s2941_s15  ;;  %s2426_s15 = sld [smem:[#allocation19 + $0x10]] }
 0x155   : > { %v399_v39 = vpop.permute.xlu0 %398  ;;  %v395_v40 = vpop.permute.xlu1 %394 }
 0x156   : > { %v408_v45 = vsel %vm380_vm13, %v399_v39, 0.0 }
 0x157   : > { %v453_v51 = vrot.slane %v408_v45, %v2232_v37  ;;  %v1194_v45 = vstv %s2412_s9  ;;  %s2504_s9 = sld [smem:[#allocation19 + $0x4f]] }
 0x159   : > { %v425_v41 = vpop.permute.xlu0 %424  ;;  %v397_v42 = vpop.permute.xlu1 %396 }
 0x15a   : > { %v401_v43 = vsel %vm400_vm12, %v395_v40, %v397_v42  ;;  %v402_v44 = vsel %vm400_vm12, %v397_v42, %v399_v39  ;;  %v1170_v40 = vstv %s2404_s4  ;;  %s2481_s4 = sld [smem:[#allocation19 + $0x42]] }
 0x15b   : > { %v406_v46 = vsel %vm378_vm14, %v401_v43, 0.0  ;;  %v407_v47 = vsel %vm379_vm15, %v402_v44, 0.0  ;;  %v1206_v44 = vstv %s2410_s7  ;;  %s2497_s7 = sld [smem:[#allocation19 + $0x3a]] }
 0x15c   : > { %v439_v48 = vcombine.low %v406_v46, %v407_v47  ;;  %v1230_v46 = vstv %s2420_s10  ;;  %s2506_s10 = sld [smem:[#allocation19 + $0x48]] }
 0x15d   : > { %v511_v49 = vpop.permute.xlu0 %510  ;;  %v423_v50 = vpop.permute.xlu1 %422 }
 0x15e   : > { %v446_v52 = vrot.slane %v439_v48, %v2232_v37  ;;  %v428_v60 = vsel %vm400_vm12, %v423_v50, %v425_v41  ;;  %v1218_v48 = vstv %s2422_s6  ;;  %v1344_v50 = vstv %s2424_s12  ;;  %s2495_s6 = sld [smem:[#allocation19 + $0x41]]  ;;  %s2663_s12 = sld [smem:[#allocation19 + $0xb]] }
 0x15f   : > { %v433_v1 = vsel %vm378_vm14, %v428_v60, 0.0  ;;  %vm861_vm14 = vcmp.lt.s32.totalorder %v2248_v55, 13 }
 0x160   : > { %v454_v56 = vcombine.low %v446_v52, %v453_v51  ;;  %v1331_v51 = vstv %s2428_s11  ;;  %s2656_s11 = sld [smem:[#allocation19 + $0x3c]] }
 0x161   : > { %v515_v61 = vpop.permute.xlu0 %514  ;;  %v427_v62 = vpop.permute.xlu1 %426 }
 0x162   : > { %v461_v63 = vrot.slane %v454_v56, %v2232_v37  ;;  %v429_v3 = vsel %vm400_vm12, %v425_v41, %v427_v62  ;;  %v435_v4 = vsel %vm380_vm13, %v427_v62, 0.0  ;;  %v524_v12 = vsel %vm496_vm0, %v515_v61, 0.0 }
 0x163   : > { %v434_v2 = vsel %vm379_vm15, %v429_v3, 0.0  ;;  %v481_v9 = vrot.slane %v435_v4, %v2232_v37  ;;  %v569_v20 = vrot.slane %v524_v12, %v2232_v37  ;;  %v1286_v3 = vstv %s2435_s28  ;;  %s2654_s28 = sld [smem:[#allocation19 + $0x12]] }
 0x164   : > { %463 = vst.msk [vmem:[#allocation5] sm:$0x7] %vm2295_vm11, %v461_v63  ;;  %v467_v5 = vcombine.low %v433_v1, %v434_v2  ;;  %v1274_v1 = vstv %s2441_s13  ;;  %v1310_v2 = vstv %s2443_s2  ;;  %vm744_vm12 = vcmp.lt.s32.totalorder %v2246_v54, 14  ;;  %s2633_s2 = sld [smem:[#allocation19 + $0x26]]  ;;  %s2665_s13 = sld [smem:[#allocation19 + $0x51]] }
 0x165   : > { %v541_v6 = vpop.permute.xlu0 %540  ;;  %v513_v7 = vpop.permute.xlu1 %512  ;;  %vm765_vm13 = vcmask 1006592   ;;  %vm881_vm15 = vcmask 998400  }
 0x166   : > { %v474_v8 = vrot.slane %v467_v5, %v2232_v37  ;;  %v517_v10 = vsel %vm516_vm1, %v511_v49, %v513_v7  ;;  %v518_v11 = vsel %vm516_vm1, %v513_v7, %v515_v61  ;;  %v1262_v49 = vstv %s2426_s15  ;;  %s2680_s15 = sld [smem:[#allocation19 + $0x4a]] }
 0x167   : > { %v522_v13 = vsel %vm494_vm2, %v517_v10, 0.0  ;;  %v523_v14 = vsel %vm495_vm3, %v518_v11, 0.0  ;;  %v1249_v61 = vstv %s2433_s14  ;;  %s2594_s14 = sld [smem:[#allocation19 + $0x57]] }
 0x168   : > { %v482_v15 = vcombine.low %v474_v8, %v481_v9  ;;  %v555_v16 = vcombine.low %v522_v13, %v523_v14  ;;  %v1298_v13 = vstv %s2455_s16  ;;  %s2688_s16 = sld [smem:[#allocation19 + $0x20]] }
 0x169   : > { %v612_v17 = vpop.permute.xlu0 %611  ;;  %v539_v19 = vpop.permute.xlu1 %538 }
 0x16a   : > { %v613_v18 = vrot.slane %v612_v17, 1  ;;  %v489_v21 = vrot.slane %v482_v15, %v2232_v37  ;;  %v562_v22 = vrot.slane %v555_v16, %v2232_v37  ;;  %v544_v28 = vsel %vm516_vm1, %v539_v19, %v541_v6 }
 0x16b   : > { %v549_v36 = vsel %vm494_vm2, %v544_v28, 0.0  ;;  %v2470_v43 = vld [vmem:[#allocation5] sm:$0x7]  ;;  %vm1102_vm2 = vcmask 785408  }
 0x16c   : > { %v615_v23 = vsel %vm614_vm4, %v612_v17, %v613_v18  ;;  %491 = vst.msk [vmem:[#allocation12] sm:$0x7] %vm2295_vm11, %v489_v21  ;;  %v570_v27 = vcombine.low %v562_v22, %v569_v20  ;;  %v1181_v63 = vmul.f32 %v1180_v24, %v2470_v43  ;;  %v1168_v11 = vmul.f32 %v1167_v26, %v2470_v43 }
 0x16d   : > { %617 = vst.msk [vmem:[#allocation7] sm:$0x7] %vm2295_vm11, %v615_v23  ;;  %v644_v29 = vpop.permute.xlu0 %643  ;;  %v543_v30 = vpop.permute.xlu1 %542  ;;  %v1205_v24 = vmul.f32 %v1204_v0, %v2470_v43  ;;  %v1368_v26 = vstv %s2475_s17  ;;  %s2690_s17 = sld [smem:[#allocation19 + $0x19]] }
 0x16e   : > { %v577_v59 = vrot.slane %v570_v27, %v2232_v37  ;;  %v545_v33 = vsel %vm516_vm1, %v541_v6, %v543_v30  ;;  %v551_v39 = vsel %vm496_vm0, %v543_v30, 0.0  ;;  %v1356_v27 = vstv %s2477_s27  ;;  %s2700_s27 = sld [smem:[#allocation19 + $0x5f]] }
 0x16f   : > { %v550_v38 = vsel %vm495_vm3, %v545_v33, 0.0  ;;  %v597_v56 = vrot.slane %v551_v39, %v2232_v37  ;;  %v1346_v30 = vstv %s2481_s4  ;;  %vm859_vm0 = vcmp.lt.s32.totalorder %v2244_v53, 13  ;;  %s2708_s4 = sld [smem:[#allocation19 + $0x58]] }
 0x170   : > { %579 = vst.msk [vmem:[#allocation6] sm:$0x7] %vm2295_vm11, %v577_v59  ;;  %v583_v41 = vcombine.low %v549_v36, %v550_v38  ;;  %v1334_v59 = vstv %s2484_s26  ;;  %s2646_s26 = sld [smem:[#allocation19 + $0x43]]  ;;  %vm860_vm1 = vcmp.lt.s32.totalorder %v2246_v54, 13  ;;  %v1440_v53 = vstv %s2680_s15  ;;  %s2781_s15 = sld [smem:[#allocation19 + $0x45]] }
 0x171   : > { %v648_v42 = vpop.permute.xlu0 %647  ;;  %v620_v47 = vpop.permute.xlu1 %619  ;;  %v1450_v55 = vstv %s2688_s16  ;;  %s2785_s16 = sld [smem:[#allocation19 + $0x3e]]  ;;  %vm1115_vm3 = vcmask 654336  }
 0x172   : > { %v590_v52 = vrot.slane %v583_v41, %v2232_v37  ;;  %v621_v60 = vrot.slane %v620_v47, 1  ;;  %v657_v9 = vsel %vm629_vm5, %v648_v42, 0.0 }
 0x173   : > { %v1169_v62 = vld [vmem:[#allocation12] sm:$0x7]  ;;  %v702_v33 = vrot.slane %v657_v9, %v2232_v37 }
 0x174   : > { %v598_v4 = vcombine.low %v590_v52, %v597_v56  ;;  %v622_v5 = vsel %vm614_vm4, %v620_v47, %v621_v60  ;;  %v1183_v7 = vmul.f32 %v1182_v34, %v1169_v62  ;;  %v1171_v8 = vmul.f32 %v1170_v40, %v1169_v62 }
 0x175   : > { %v674_v6 = vpop.permute.xlu0 %673  ;;  %624 = vst.msk [vmem:[#allocation14] sm:$0x7] %vm2295_vm11, %v622_v5  ;;  %v646_v10 = vpop.permute.xlu1 %645  ;;  %v1207_v12 = vmul.f32 %v1206_v44, %v1169_v62  ;;  %v1195_v21 = vmul.f32 %v1194_v45, %v1169_v62  ;;  %v1231_v36 = vmul.f32 %v1230_v46, %v1169_v62  ;;  %v1219_v39 = vmul.f32 %v1218_v48, %v1169_v62 }
 0x176   : > { %v605_v14 = vrot.slane %v598_v4, %v2232_v37  ;;  %v650_v15 = vsel %vm649_vm8, %v644_v29, %v646_v10  ;;  %v651_v16 = vsel %vm649_vm8, %v646_v10, %v648_v42  ;;  %v1184_v17 = vadd.f32 %v1183_v7, %v1181_v63 }
 0x177   : > { %v655_v18 = vsel %vm627_vm6, %v650_v15, 0.0  ;;  %v656_v19 = vsel %vm628_vm7, %v651_v16, 0.0  ;;  %v1172_v20 = vadd.f32 %v1171_v8, %v1168_v11  ;;  %v1193_v29 = vmul.f32 %v1192_v31, %v2470_v43  ;;  %v2549_v47 = vld [vmem:[#allocation6] sm:$0x7] }
 0x178   : > { %607 = vst.msk [vmem:[#allocation13] sm:$0x7] %vm2295_vm11, %v605_v14  ;;  %v688_v22 = vcombine.low %v655_v18, %v656_v19  ;;  %1186 = vrot.lane.b32.xlu1 %v1184_v17, %s2978_s1  ;;  %v1208_v0 = vadd.f32 %v1207_v12, %v1205_v24  ;;  %v1229_v42 = vmul.f32 %v1228_v32, %v2470_v43  ;;  %v1264_v44 = vstv %s2495_s6  ;;  %s2982_s6 = smov 32  }
 0x179   : > { %v760_v23 = vpop.permute.xlu0 %759  ;;  %1174 = vrot.lane.b32.xlu0 %v1172_v20, %s2979_s23  ;;  %v672_v28 = vpop.permute.xlu1 %671  ;;  %v1196_v38 = vadd.f32 %v1195_v21, %v1193_v29  ;;  %v1217_v46 = vmul.f32 %v1216_v35, %v2470_v43  ;;  %v1252_v48 = vstv %s2497_s7  ;;  %v1288_v52 = vstv %s2504_s9  ;;  %s2714_s7 = sld [smem:[#allocation19 + $0x2e]]  ;;  %s2719_s9 = sld [smem:[#allocation19 + $0x27]] }
 0x17a   : > { %v695_v34 = vrot.slane %v688_v22, %v2232_v37  ;;  %v677_v40 = vsel %vm649_vm8, %v672_v28, %v674_v6  ;;  %v1276_v56 = vstv %s2506_s10  ;;  %v1232_v63 = vadd.f32 %v1231_v36, %v1229_v42  ;;  %s2728_s10 = sld [smem:[#allocation19 + $0x44]] }
 0x17b   : > { %v682_v35 = vsel %vm627_vm6, %v677_v40, 0.0  ;;  %v1220_v4 = vadd.f32 %v1219_v39, %v1217_v46  ;;  %v1312_v7 = vstv %s2517_s19  ;;  %v1263_v9 = vmul.f32 %v1262_v49, %v2549_v47  ;;  %s2983_s19 = smov 48  }
 0x17c   : > { %v703_v31 = vcombine.low %v695_v34, %v702_v33  ;;  %1210 = vrot.lane.b32.xlu1 %v1208_v0, %s2980_s18  ;;  %v1250_v16 = vmul.f32 %v1249_v61, %v2549_v47  ;;  %v1300_v33 = vstv %s2543_s22  ;;  %v1275_v36 = vmul.f32 %v1274_v1, %v2549_v47  ;;  %s2734_s22 = sld [smem:[#allocation19 + $0x3d]] }
 0x17d   : > { %v764_v41 = vpop.permute.xlu0 %763  ;;  %1198 = vrot.lane.b32.xlu0 %v1196_v38, %s2981_s20  ;;  %v676_v45 = vpop.permute.xlu1 %675  ;;  %v1370_v38 = vstv %s2554_s30  ;;  %v1358_v39 = vstv %s2556_s24  ;;  %s2618_s30 = sld [smem:[#allocation19 + $0x2d]]  ;;  %s2739_s24 = sld [smem:[#allocation19 + $0x13]]  ;;  %vm1128_vm4 = vcmask 523264   ;;  %vm1154_vm6 = vcmask 261120  }
 0x17e   : > { %v710_v32 = vrot.slane %v703_v31, %v2232_v37  ;;  %v678_v60 = vsel %vm649_vm8, %v674_v6, %v676_v45  ;;  %v684_v62 = vsel %vm629_vm5, %v676_v45, 0.0  ;;  %v773_v12 = vsel %vm745_vm9, %v764_v41, 0.0  ;;  %v2607_v45 = vld [vmem:[#allocation14] sm:$0x7] }
 0x17f   : > { %v683_v43 = vsel %vm628_vm7, %v678_v60, 0.0  ;;  %v1251_v5 = vld [vmem:[#allocation13] sm:$0x7]  ;;  %v730_v14 = vrot.slane %v684_v62, %v2232_v37  ;;  %v818_v34 = vrot.slane %v773_v12, %v2232_v37  ;;  %v1299_v62 = vmul.f32 %v1298_v13, %v2549_v47 }
 0x180   : > { %712 = vst.msk [vmem:[#allocation8] sm:$0x7] %vm2295_vm11, %v710_v32  ;;  %v716_v6 = vcombine.low %v682_v35, %v683_v43  ;;  %1234 = vrot.lane.b32.xlu1 %v1232_v63, %s2982_s6  ;;  %v1265_v10 = vmul.f32 %v1264_v44, %v1251_v5  ;;  %v1253_v11 = vmul.f32 %v1252_v48, %v1251_v5  ;;  %v2605_v44 = vld [vmem:[#allocation7] sm:$0x7]  ;;  %v1394_v48 = vstv %s2567_s25  ;;  %s2744_s25 = sld [smem:[#allocation19 + $0xc]] }
 0x181   : > { %v790_v8 = vpop.permute.xlu0 %789  ;;  %1222 = vrot.lane.b32.xlu0 %v1220_v4, %s2983_s19  ;;  %v762_v15 = vpop.permute.xlu1 %761  ;;  %v1289_v17 = vmul.f32 %v1288_v52, %v1251_v5  ;;  %v1277_v28 = vmul.f32 %v1276_v56, %v1251_v5  ;;  %v1313_v42 = vmul.f32 %v1312_v7, %v1251_v5  ;;  %v1301_v1 = vmul.f32 %v1300_v33, %v1251_v5 }
 0x182   : > { %v723_v18 = vrot.slane %v716_v6, %v2232_v37  ;;  %v766_v49 = vsel %vm765_vm13, %v760_v23, %v762_v15  ;;  %v767_v19 = vsel %vm765_vm13, %v762_v15, %v764_v41  ;;  %v1266_v20 = vadd.f32 %v1265_v10, %v1263_v9 }
 0x183   : > { %v771_v21 = vsel %vm743_vm10, %v766_v49, 0.0  ;;  %v772_v22 = vsel %vm744_vm12, %v767_v19, 0.0  ;;  %v1254_v24 = vadd.f32 %v1253_v11, %v1250_v16  ;;  %v1287_v23 = vmul.f32 %v1286_v3, %v2549_v47 }
 0x184   : > { %v731_v61 = vcombine.low %v723_v18, %v730_v14  ;;  %v804_v29 = vcombine.low %v771_v21, %v772_v22  ;;  %1268 = vrot.lane.b32.xlu1 %v1266_v20, %s2978_s1  ;;  %v1278_v46 = vadd.f32 %v1277_v28, %v1275_v36  ;;  %v1311_v32 = vmul.f32 %v1310_v2, %v2549_v47 }
 0x185   : > { %1256 = vrot.lane.b32.xlu0 %v1254_v24, %s2979_s23  ;;  %v788_v0 = vpop.permute.xlu1 %787  ;;  %v876_v3 = vpop.permute.xlu0 %875  ;;  %v1290_v41 = vadd.f32 %v1289_v17, %v1287_v23  ;;  %v1345_v63 = vmul.f32 %v1344_v50, %v2605_v44  ;;  %v1347_v35 = vmul.f32 %v1346_v30, %v2607_v45  ;;  %v1335_v43 = vmul.f32 %v1334_v59, %v2607_v45 }
 0x186   : > { %v738_v31 = vrot.slane %v731_v61, %v2232_v37  ;;  %v811_v40 = vrot.slane %v804_v29, %v2232_v37  ;;  %v793_v56 = vsel %vm765_vm13, %v788_v0, %v790_v8  ;;  %v1314_v5 = vadd.f32 %v1313_v42, %v1311_v32 }
 0x187   : > { %v1332_v13 = vmul.f32 %v1331_v51, %v2605_v44  ;;  %v798_v50 = vsel %vm743_vm10, %v793_v56, 0.0  ;;  %v1302_v47 = vadd.f32 %v1301_v1, %v1299_v62  ;;  %v1382_v51 = vstv %s2594_s14  ;;  %s2748_s14 = sld [smem:[#allocation19 + $0x52]] }
 0x188   : > { %740 = vst.msk [vmem:[#allocation15] sm:$0x7] %vm2295_vm11, %v738_v31  ;;  %v819_v52 = vcombine.low %v811_v40, %v818_v34  ;;  %1292 = vrot.lane.b32.xlu1 %v1290_v41, %s2980_s18  ;;  %v1348_v9 = vadd.f32 %v1347_v35, %v1345_v63  ;;  %v1369_v11 = vmul.f32 %v1368_v26, %v2605_v44  ;;  %v1392_v22 = vstv %s2618_s30  ;;  %s2752_s30 = sld [smem:[#allocation19 + $0x4b]] }
 0x189   : > { %1280 = vrot.lane.b32.xlu0 %v1278_v46, %s2981_s20  ;;  %v792_v60 = vpop.permute.xlu1 %791  ;;  %v880_v7 = vpop.permute.xlu0 %879  ;;  %v1336_v10 = vadd.f32 %v1335_v43, %v1332_v13  ;;  %v1371_v12 = vmul.f32 %v1370_v38, %v2607_v45  ;;  %v1359_v19 = vmul.f32 %v1358_v39, %v2607_v45  ;;  %v1357_v61 = vmul.f32 %v1356_v27, %v2605_v44 }
 0x18a   : > { %v826_v2 = vrot.slane %v819_v52, %v2232_v37  ;;  %v794_v4 = vsel %vm765_vm13, %v790_v8, %v792_v60  ;;  %v800_v59 = vsel %vm745_vm9, %v792_v60, 0.0  ;;  %v889_v18 = vsel %vm861_vm14, %v880_v7, 0.0 }
 0x18b   : > { %v799_v30 = vsel %vm744_vm12, %v794_v4, 0.0  ;;  %v846_v15 = vrot.slane %v800_v59, %v2232_v37  ;;  %v1372_v28 = vadd.f32 %v1371_v12, %v1369_v11  ;;  %v1395_v29 = vmul.f32 %v1394_v48, %v2607_v45  ;;  %v1412_v48 = vld [vmem:[#allocation8] sm:$0x7] }
 0x18c   : > { %828 = vst.msk [vmem:[#allocation9] sm:$0x7] %vm2295_vm11, %v826_v2  ;;  %v832_v6 = vcombine.low %v798_v50, %v799_v30  ;;  %1316 = vrot.lane.b32.xlu1 %v1314_v5, %s2982_s6  ;;  %v1380_v23 = vstv %s2633_s2  ;;  %v934_v33 = vrot.slane %v889_v18, %v2232_v37  ;;  %v1383_v36 = vmul.f32 %v1382_v51, %v2607_v45  ;;  %s2756_s2 = sld [smem:[#allocation19 + $0x21]] }
 0x18d   : > { %1304 = vrot.lane.b32.xlu0 %v1302_v47, %s2983_s19  ;;  %v878_v8 = vpop.permute.xlu1 %877  ;;  %v906_v38 = vpop.permute.xlu0 %905  ;;  %v1360_v39 = vadd.f32 %v1359_v19, %v1357_v61  ;;  %v1393_v27 = vmul.f32 %v1392_v22, %v2605_v44  ;;  %v1428_v40 = vstv %s2646_s26  ;;  %v1381_v42 = vmul.f32 %v1380_v23, %v2605_v44  ;;  %s2761_s26 = sld [smem:[#allocation19 + $0x1a]] }
 0x18e   : > { %v839_v14 = vrot.slane %v832_v6, %v2232_v37  ;;  %v882_v16 = vsel %vm881_vm15, %v876_v3, %v878_v8  ;;  %v883_v17 = vsel %vm881_vm15, %v878_v8, %v880_v7  ;;  %v1416_v45 = vstv %s2656_s11  ;;  %s2771_s11 = sld [smem:[#allocation19 + $0x59]] }
 0x18f   : > { %v887_v26 = vsel %vm859_vm0, %v882_v16, 0.0  ;;  %v888_v49 = vsel %vm860_vm1, %v883_v17, 0.0  ;;  %v2697_v31 = vld [vmem:[#allocation15] sm:$0x7]  ;;  %v1396_v1 = vadd.f32 %v1395_v29, %v1393_v27  ;;  %v1426_v52 = vstv %s2654_s28  ;;  %s2765_s28 = sld [smem:[#allocation19 + $0x60]] }
 0x190   : > { %v847_v20 = vcombine.low %v839_v14, %v846_v15  ;;  %v920_v21 = vcombine.low %v887_v26, %v888_v49  ;;  %1350 = vrot.lane.b32.xlu1 %v1348_v9, %s2978_s1  ;;  %v1413_v56 = vstv %s2663_s12  ;;  %v1452_v32 = vstv %s2665_s13  ;;  %s2775_s12 = sld [smem:[#allocation19 + $0x2f]]  ;;  %s2778_s13 = sld [smem:[#allocation19 + $0x28]] }
 0x191   : > { %1338 = vrot.lane.b32.xlu0 %v1336_v10, %s2979_s23  ;;  %v904_v24 = vpop.permute.xlu1 %903  ;;  %v1384_v63 = vadd.f32 %v1383_v36, %v1381_v42  ;;  %v1429_v44 = vmul.f32 %v1428_v40, %v2697_v31  ;;  %v1417_v4 = vmul.f32 %v1416_v45, %v2697_v31  ;;  %v1427_v13 = vmul.f32 %v1426_v52, %v1412_v48 }
 0x192   : > { %v854_v34 = vrot.slane %v847_v20, %v2232_v37  ;;  %v927_v0 = vrot.slane %v920_v21, %v2232_v37  ;;  %v909_v41 = vsel %vm881_vm15, %v904_v24, %v906_v38  ;;  %v1414_v54 = vmul.f32 %v1413_v56, %v1412_v48 }
 0x193   : > { %v914_v35 = vsel %vm859_vm0, %v909_v41, 0.0  ;;  %v1438_v50 = vstv %s2690_s17  ;;  %v1430_v47 = vadd.f32 %v1429_v44, %v1427_v13  ;;  %v1453_v7 = vmul.f32 %v1452_v32, %v2697_v31  ;;  %v1494_v24 = vld [vmem:[#allocation9] sm:$0x7]  ;;  %s2789_s17 = sld [smem:[#allocation19 + $0x14]] }
 0x194   : > { %856 = vst.msk [vmem:[#allocation16] sm:$0x7] %vm2295_vm11, %v854_v34  ;;  %v935_v3 = vcombine.low %v927_v0, %v934_v33  ;;  %1374 = vrot.lane.b32.xlu1 %v1372_v28, %s2980_s18  ;;  %v1418_v6 = vadd.f32 %v1417_v4, %v1414_v54  ;;  %v1441_v51 = vmul.f32 %v1440_v53, %v2697_v31  ;;  %v1476_v8 = vstv %s2700_s27  ;;  %s2792_s27 = sld [smem:[#allocation19 + $0xd]] }
 0x195   : > { %1362 = vrot.lane.b32.xlu0 %v1360_v39, %s2981_s20  ;;  %v908_v46 = vpop.permute.xlu1 %907  ;;  %v1451_v10 = vmul.f32 %v1450_v55, %v1412_v48  ;;  %v1464_v11 = vstv %s2708_s4  ;;  %v1439_v12 = vmul.f32 %v1438_v50, %v1412_v48  ;;  %v1474_v14 = vstv %s2714_s7  ;;  %s2795_s4 = sld [smem:[#allocation19 + $0x53]]  ;;  %s2799_s7 = sld [smem:[#allocation19 + $0x4c]] }
 0x196   : > { %v942_v60 = vrot.slane %v935_v3, %v2232_v37  ;;  %v910_v62 = vsel %vm881_vm15, %v906_v38, %v908_v46  ;;  %v916_v2 = vsel %vm861_vm14, %v908_v46, 0.0  ;;  %v1477_v17 = vmul.f32 %v1476_v8, %v2697_v31 }
 0x197   : > { %v915_v43 = vsel %vm860_vm1, %v910_v62, 0.0  ;;  %v962_v59 = vrot.slane %v916_v2, %v2232_v37  ;;  %v1454_v16 = vadd.f32 %v1453_v7, %v1451_v10  ;;  %v1462_v18 = vstv %s2719_s9  ;;  %s2803_s9 = sld [smem:[#allocation19 + $0x22]] }
 0x198   : > { %944 = vst.msk [vmem:[#allocation10] sm:$0x7] %vm2295_vm11, %v942_v60  ;;  %v948_v5 = vcombine.low %v914_v35, %v915_v43  ;;  %1398 = vrot.lane.b32.xlu1 %v1396_v1, %s2982_s6  ;;  %v1442_v26 = vadd.f32 %v1441_v51, %v1439_v12  ;;  %v1465_v49 = vmul.f32 %v1464_v11, %v2697_v31  ;;  %v1510_v20 = vstv %s2728_s10  ;;  %s2806_s10 = sld [smem:[#allocation19 + $0x1b]] }
 0x199   : > { %1386 = vrot.lane.b32.xlu0 %v1384_v63, %s2983_s19  ;;  %v1498_v21 = vstv %s2734_s22  ;;  %v1463_v22 = vmul.f32 %v1462_v18, %v1412_v48  ;;  %v1508_v28 = vstv %s2739_s24  ;;  %v1495_v25 = vstv %s2744_s25  ;;  %s2809_s22 = sld [smem:[#allocation19 + $0x61]]  ;;  %s2813_s24 = sld [smem:[#allocation19 + $0x5a]] }
 0x19a   : > { %v955_v30 = vrot.slane %v948_v5, %v2232_v37  ;;  %v1534_v34 = vstv %s2748_s14  ;;  %v1509_v0 = vmul.f32 %v1508_v28, %v1494_v24  ;;  %v1522_v36 = vstv %s2752_s30  ;;  %s2817_s25 = sld [smem:[#allocation19 + $0x30]]  ;;  %s2820_s14 = sld [smem:[#allocation19 + $0x29]]  ;;  %v1087_v28 = vpop.permute.xlu0 %1086 }
 0x19b   : > { %v1497_v19 = vld [vmem:[#allocation16] sm:$0x7]  ;;  %v1466_v23 = vadd.f32 %v1465_v49, %v1463_v22  ;;  %v1496_v38 = vmul.f32 %v1495_v25, %v1494_v24  ;;  %v1532_v39 = vstv %s2756_s2  ;;  %v1520_v40 = vstv %s2761_s26  ;;  %v1100_v25 = vpop.permute.xlu1 %1099  ;;  %s1818_s30 = sld [smem:[#allocation19 + $0x34]]  ;;  %s1769_s2 = sld [smem:[#allocation19 + $0x3]] }
 0x19c   : > { %v963_v9 = vcombine.low %v955_v30, %v962_v59  ;;  %1432 = vrot.lane.b32.xlu1 %v1430_v47, %s2978_s1  ;;  %v1511_v29 = vmul.f32 %v1510_v20, %v1497_v19  ;;  %v1499_v33 = vmul.f32 %v1498_v21, %v1497_v19  ;;  %v1535_v31 = vmul.f32 %v1534_v34, %v1497_v19  ;;  %s1819_s26 = sld [smem:[#allocation19 + $0x35]] }
 0x19d   : > { %1420 = vrot.lane.b32.xlu0 %v1418_v6, %s2979_s23  ;;  %v1523_v41 = vmul.f32 %v1522_v36, %v1497_v19  ;;  %v1558_v42 = vstv %s2765_s28  ;;  %v1533_v45 = vmul.f32 %v1532_v39, %v1494_v24  ;;  %v1546_v46 = vstv %s2771_s11  ;;  %s1770_s28 = sld [smem:[#allocation19 + $0x4]]  ;;  %s1820_s11 = sld [smem:[#allocation19 + $0x36]] }
 0x19e   : > { %v970_v15 = vrot.slane %v963_v9, %v2232_v37  ;;  %v1475_v37 = vmul.f32 %v1474_v14, %v1412_v48  ;;  %v1512_v27 = vadd.f32 %v1511_v29, %v1509_v0  ;;  %v1500_v3 = vadd.f32 %v1499_v33, %v1496_v38  ;;  %v1071_v33 = vld [vmem:[#allocation4] sm:$0x3] }
 0x19f   : > { %v1521_v1 = vmul.f32 %v1520_v40, %v1494_v24  ;;  %v1556_v48 = vstv %s2775_s12  ;;  %v1536_v52 = vadd.f32 %v1535_v31, %v1533_v45  ;;  %v1559_v56 = vmul.f32 %v1558_v42, %v1497_v19  ;;  %v1576_v4 = vld [vmem:[#allocation10] sm:$0x7]  ;;  %v1113_v31 = vpop.permute.xlu0 %1112  ;;  %s1771_s12 = sld [smem:[#allocation19 + $0x5]] }
 0x1a0   : > { %972 = vst.msk [vmem:[#allocation17] sm:$0x7] %vm2295_vm11, %v970_v15  ;;  %1456 = vrot.lane.b32.xlu1 %v1454_v16, %s2980_s18  ;;  %v1478_v61 = vadd.f32 %v1477_v17, %v1475_v37  ;;  %v1544_v32 = vstv %s2778_s13  ;;  %v1547_v62 = vmul.f32 %v1546_v46, %v1497_v19  ;;  %v1592_v44 = vstv %s2781_s15  ;;  %s1821_s13 = sld [smem:[#allocation19 + $0x37]]  ;;  %s1772_s15 = sld [smem:[#allocation19 + $0x6]] }
 0x1a1   : > { %1444 = vrot.lane.b32.xlu0 %v1442_v26, %s2981_s20  ;;  %v1524_v60 = vadd.f32 %v1523_v41, %v1521_v1  ;;  %v1557_v35 = vmul.f32 %v1556_v48, %v1494_v24  ;;  %v1580_v43 = vstv %s2785_s16  ;;  %v1545_v2 = vmul.f32 %v1544_v32, %v1494_v24  ;;  %v1126_v41 = vpop.permute.xlu1 %1125  ;;  %s1650_s16 = sld [smem:[#allocation20]] }
 0x1a2   : > { %v1590_v5 = vstv %s2789_s17  ;;  %v1577_v54 = vstv %s2792_s27  ;;  %v1616_v30 = vstv %s2795_s4  ;;  %v1604_v47 = vstv %s2799_s7  ;;  %s1871_s17 = sshll.u32 %s2116_s21, 7  ;;  %s2984_s27 = sshll.u32 %s2200_s5, 3 }
 0x1a3   : > { %v1560_v13 = vadd.f32 %v1559_v56, %v1557_v35  ;;  %v1548_v55 = vadd.f32 %v1547_v62, %v1545_v2  ;;  %v1591_v59 = vmul.f32 %v1590_v5, %v1576_v4  ;;  %v1578_v7 = vmul.f32 %v1577_v54, %v1576_v4  ;;  %v1139_v48 = vpop.permute.xlu0 %1138  ;;  %v1161_v35 = vld [vmem:[#allocation12] sm:$0x3]  ;;  %v1158_v5 = vld [vmem:[#allocation5] sm:$0x3]  ;;  %s141_s4 = scalar_lea.vmem [#allocation24], %s2984_s27  ;;  %s2068_s21 = smov [#allocation24]  }
 0x1a4   : > { %1480 = vrot.lane.b32.xlu1 %v1478_v61, %s2982_s6  ;;  %v1614_v6 = vstv %s2803_s9  ;;  %v1602_v9 = vstv %s2806_s10  ;;  %v1640_v12 = vstv %s2809_s22  ;;  %v1074_v61 = vld [vmem:[#allocation11] sm:$0x3]  ;;  %v1088_v34 = vrot.slane %v1087_v28, 1  ;;  %s1688_s7 = sshll.u32 %s141_s4, 4  ;;  %s2889_s22 = scalar_lea.hbm %s2936_s3, %s1871_s17  ;;  %s2891_s7 = int_to_ptr.vmem [resolvable:$true] %s1688_s7 }
 0x1a5   : > { %1468 = vrot.lane.b32.xlu0 %v1466_v23, %s2983_s19  ;;  %v1615_v14 = vmul.f32 %v1614_v6, %v1576_v4  ;;  %v1628_v15 = vstv %s2813_s24  ;;  %v1603_v16 = vmul.f32 %v1602_v9, %v1576_v4  ;;  %v1638_v17 = vstv %s2817_s25  ;;  %v1152_v32 = vpop.permute.xlu1 %1151  ;;  %s1674_s24 = scalar_lea.sflag [#allocation23], %s2200_s5  ;;  %s1981_s25 = scalar_lea.vmem %s2891_s7, 128 }
 0x1a6   : > { %v1626_v49 = vstv %s2820_s14  ;;  %v1639_v37 = vmul.f32 %v1638_v17, %v1576_v4  ;;  %vm1089_vm11 = vcmask 916480   ;;  %v1101_v36 = vrot.slane %v1100_v25, 1  ;;  %p1982_p11 = scmp.ne.s32.totalorder %s2891_s7, %s1981_s25 }
 0x1a7   : > { %v1579_v63 = vld [vmem:[#allocation17] sm:$0x7]  ;;  %v1627_v21 = vmul.f32 %v1626_v49, %v1576_v4  ;;  %v1090_v39 = vsel %vm1089_vm11, %v1087_v28, %v1088_v34  ;;  %v1114_v42 = vrot.slane %v1113_v31, 1  ;;  %v1127_v46 = vrot.slane %v1126_v41, 1 }
 0x1a8   : > { %1514 = vrot.lane.b32.xlu1 %v1512_v27, %s2978_s1  ;;  %v1593_v53 = vmul.f32 %v1592_v44, %v1579_v63  ;;  %v1581_v50 = vmul.f32 %v1580_v43, %v1579_v63  ;;  %v1617_v8 = vmul.f32 %v1616_v30, %v1579_v63  ;;  %v1605_v11 = vmul.f32 %v1604_v47, %v1579_v63  ;;  %p1983_p3 = pnand %p1982_p11, %p2985_p2 }
 0x1a9   : > { %1502 = vrot.lane.b32.xlu0 %v1500_v3, %s2979_s23  ;;  %v1641_v26 = vmul.f32 %v1640_v12, %v1579_v63  ;;  %v1629_v20 = vmul.f32 %v1628_v15, %v1579_v63  ;;  %v1103_v40 = vsel %vm1102_vm2, %v1100_v25, %v1101_v36  ;;  %v1116_v1 = vsel %vm1115_vm3, %v1113_v31, %v1114_v42 }
 0x1aa   : > { %v1594_v51 = vadd.f32 %v1593_v53, %v1591_v59  ;;  %v1582_v10 = vadd.f32 %v1581_v50, %v1578_v7  ;;  %v1618_v18 = vadd.f32 %v1617_v8, %v1615_v14  ;;  %v1606_v19 = vadd.f32 %v1605_v11, %v1603_v16  ;;  %p1984_p4 = pneg %p1983_p3 }
 0x1ab   : > { %v1642_v22 = vadd.f32 %v1641_v26, %v1639_v37  ;;  %v1630_v24 = vadd.f32 %v1629_v20, %v1627_v21  ;;  %v1129_v56 = vsel %vm1128_vm4, %v1126_v41, %v1127_v46  ;;  %vm1141_vm5 = vcmask 392192  }
 0x1ac   : > { %1538 = vrot.lane.b32.xlu1 %v1536_v52, %s2980_s18  ;;  %v1153_v63 = vrot.slane %v1152_v32, 1 }
 0x1ad   : > { %1526 = vrot.lane.b32.xlu0 %v1524_v60, %s2981_s20  ;;  %v1140_v60 = vrot.slane %v1139_v48, 1 }
 0x1ae   : > { %v1155_v4 = vsel %vm1154_vm6, %v1152_v32, %v1153_v63  ;;  %v1326_v63 = vstv %s1818_s30 }
 0x1af   : > { %v1142_v44 = vsel %vm1141_vm5, %v1139_v48, %v1140_v60 }
 0x1b0   : > { %1562 = vrot.lane.b32.xlu1 %v1560_v13, %s2982_s6 }
 0x1b1   : > { %1550 = vrot.lane.b32.xlu0 %v1548_v55, %s2983_s19 }
 0x1b4   : > { %1596 = vrot.lane.b32.xlu1 %v1594_v51, %s2978_s1  ;;  %s1815_s1 = sld [smem:[#allocation19 + $0x31]] }
 0x1b5   : > { %1584 = vrot.lane.b32.xlu0 %v1582_v10, %s2979_s23  ;;  %s973_s23 = sld [smem:[#allocation19]] }
 0x1b8   : > { %1620 = vrot.lane.b32.xlu1 %v1618_v18, %s2980_s18  ;;  %s1767_s18 = sld [smem:[#allocation19 + $0x1]]  ;;  %v1243_v18 = vld [vmem:[#allocation13] sm:$0x3] }
 0x1b9   : > { %1608 = vrot.lane.b32.xlu0 %v1606_v19, %s2981_s20  ;;  %s1816_s20 = sld [smem:[#allocation19 + $0x32]] }
 0x1ba   : > { %v1075_v29 = vstv %s1815_s1 }
 0x1bb   : > { %v1072_v23 = vstv %s973_s23  ;;  %v1076_v0 = vmul.f32 %v1075_v29, %v1074_v61 }
 0x1bc   : > { %1644 = vrot.lane.b32.xlu1 %v1642_v22, %s2982_s6  ;;  %v1073_v38 = vmul.f32 %v1072_v23, %v1071_v33  ;;  %s1817_s6 = sld [smem:[#allocation19 + $0x33]]  ;;  %v1240_v22 = vld [vmem:[#allocation6] sm:$0x3] }
 0x1bd   : > { %1632 = vrot.lane.b32.xlu0 %v1630_v24, %s2983_s19  ;;  %s1768_s19 = sld [smem:[#allocation19 + $0x2]] }
 0x1be   : > { %v1077_v27 = vadd.f32 %v1076_v0, %v1073_v38  ;;  %v1159_v13 = vstv %s1767_s18 }
 0x1bf   : > { %v1162_v43 = vstv %s1816_s20  ;;  %v1160_v55 = vmul.f32 %v1159_v13, %v1158_v5  ;;  %v1323_v5 = vstv %s1769_s2 }
 0x1c0   : > { %v1092_v3 = vadd.f32 %v1090_v39, %v1077_v27  ;;  %v1163_v53 = vmul.f32 %v1162_v43, %v1161_v35 }
 0x1c2   : > { %v1105_v45 = vadd.f32 %v1103_v40, %v1092_v3  ;;  %v1164_v30 = vadd.f32 %v1163_v53, %v1160_v55  ;;  %v1244_v26 = vstv %s1817_s6 }
 0x1c3   : > { %v1241_v24 = vstv %s1768_s19  ;;  %v1245_v61 = vmul.f32 %v1244_v26, %v1243_v18 }
 0x1c4   : > { %v1118_v52 = vadd.f32 %v1116_v1, %v1105_v45  ;;  %v1242_v33 = vmul.f32 %v1241_v24, %v1240_v22 }
 0x1c6   : > { %v1131_v62 = vadd.f32 %v1129_v56, %v1118_v52  ;;  %v1246_v39 = vadd.f32 %v1245_v61, %v1242_v33 }
 0x1c8   : > { %v1144_v2 = vadd.f32 %v1142_v44, %v1131_v62  ;;  %v1325_v62 = vld [vmem:[#allocation14] sm:$0x3] }
 0x1c9   : > { %v1327_v53 = vmul.f32 %v1326_v63, %v1325_v62 }
 0x1ca   : > { %v1157_v54 = vadd.f32 %v1155_v4, %v1144_v2  ;;  %v1322_v4 = vld [vmem:[#allocation7] sm:$0x3] }
 0x1cc   : > { %v1165_v6 = vadd.f32 %v1164_v30, %v1157_v54  ;;  %v1324_v30 = vmul.f32 %v1323_v5, %v1322_v4 }
 0x1ea   : > { %v1187_v50 = vpop.permute.xlu1 %1186 }
 0x1eb   : > { %v1175_v59 = vpop.permute.xlu0 %1174  ;;  %v1188_v47 = vrot.slane %v1187_v50, 1 }
 0x1ec   : > { %v1176_v7 = vrot.slane %v1175_v59, 1 }
 0x1ed   : > { %v1189_v11 = vsel %vm1102_vm2, %v1187_v50, %v1188_v47 }
 0x1ee   : > { %v1177_v51 = vsel %vm1089_vm11, %v1175_v59, %v1176_v7  ;;  %v1211_v8 = vpop.permute.xlu1 %1210 }
 0x1ef   : > { %v1179_v9 = vadd.f32 %v1177_v51, %v1165_v6  ;;  %v1199_v10 = vpop.permute.xlu0 %1198  ;;  %v1212_v12 = vrot.slane %v1211_v8, 1  ;;  %v1328_v51 = vadd.f32 %v1327_v53, %v1324_v30  ;;  %v1486_v53 = vld [vmem:[#allocation9] sm:$0x3] }
 0x1f0   : > { %v1200_v14 = vrot.slane %v1199_v10, 1 }
 0x1f1   : > { %v1191_v15 = vadd.f32 %v1189_v11, %v1179_v9  ;;  %v1213_v20 = vsel %vm1128_vm4, %v1211_v8, %v1212_v12 }
 0x1f2   : > { %v1201_v16 = vsel %vm1115_vm3, %v1199_v10, %v1200_v14  ;;  %v1235_v17 = vpop.permute.xlu1 %1234 }
 0x1f3   : > { %v1203_v49 = vadd.f32 %v1201_v16, %v1191_v15  ;;  %v1223_v19 = vpop.permute.xlu0 %1222  ;;  %v1236_v37 = vrot.slane %v1235_v17, 1 }
 0x1f4   : > { %v1224_v21 = vrot.slane %v1223_v19, 1 }
 0x1f5   : > { %v1215_v28 = vadd.f32 %v1213_v20, %v1203_v49  ;;  %v1237_v0 = vsel %vm1154_vm6, %v1235_v17, %v1236_v37  ;;  %v1407_v37 = vld [vmem:[#allocation15] sm:$0x3] }
 0x1f6   : > { %v1225_v29 = vsel %vm1141_vm5, %v1223_v19, %v1224_v21  ;;  %v1269_v25 = vpop.permute.xlu1 %1268  ;;  %v1408_v21 = vstv %s1819_s26 }
 0x1f7   : > { %v1227_v23 = vadd.f32 %v1225_v29, %v1215_v28  ;;  %v1257_v34 = vpop.permute.xlu0 %1256  ;;  %v1270_v27 = vrot.slane %v1269_v25, 1  ;;  %v1404_v29 = vld [vmem:[#allocation8] sm:$0x3]  ;;  %v1409_v33 = vmul.f32 %v1408_v21, %v1407_v37 }
 0x1f8   : > { %v1258_v36 = vrot.slane %v1257_v34, 1 }
 0x1f9   : > { %v1239_v38 = vadd.f32 %v1237_v0, %v1227_v23  ;;  %v1271_v46 = vsel %vm1102_vm2, %v1269_v25, %v1270_v27  ;;  %v1405_v25 = vstv %s1770_s28 }
 0x1fa   : > { %v1293_v31 = vpop.permute.xlu1 %1292  ;;  %v1259_v41 = vsel %vm1089_vm11, %v1257_v34, %v1258_v36 }
 0x1fb   : > { %v1247_v40 = vadd.f32 %v1246_v39, %v1239_v38  ;;  %v1281_v3 = vpop.permute.xlu0 %1280  ;;  %v1294_v1 = vrot.slane %v1293_v31, 1  ;;  %v1406_v38 = vmul.f32 %v1405_v25, %v1404_v29 }
 0x1fc   : > { %v1282_v42 = vrot.slane %v1281_v3, 1 }
 0x1fd   : > { %v1261_v45 = vadd.f32 %v1259_v41, %v1247_v40  ;;  %v1295_v35 = vsel %vm1128_vm4, %v1293_v31, %v1294_v1 }
 0x1fe   : > { %v1317_v48 = vpop.permute.xlu1 %1316  ;;  %v1283_v32 = vsel %vm1115_vm3, %v1281_v3, %v1282_v42  ;;  %v1410_v3 = vadd.f32 %v1409_v33, %v1406_v38  ;;  %v1569_v33 = vstv %s1772_s15 }
 0x1ff   : > { %v1273_v52 = vadd.f32 %v1271_v46, %v1261_v45  ;;  %v1305_v56 = vpop.permute.xlu0 %1304  ;;  %v1318_v43 = vrot.slane %v1317_v48, 1 }
 0x200   : > { %v1306_v60 = vrot.slane %v1305_v56, 1 }
 0x201   : > { %v1285_v44 = vadd.f32 %v1283_v32, %v1273_v52  ;;  %v1319_v59 = vsel %vm1154_vm6, %v1317_v48, %v1318_v43  ;;  %v1489_v43 = vld [vmem:[#allocation16] sm:$0x3] }
 0x202   : > { %v1351_v2 = vpop.permute.xlu1 %1350  ;;  %v1307_v55 = vsel %vm1141_vm5, %v1305_v56, %v1306_v60 }
 0x203   : > { %v1297_v13 = vadd.f32 %v1295_v35, %v1285_v44  ;;  %v1339_v54 = vpop.permute.xlu0 %1338  ;;  %v1352_v9 = vrot.slane %v1351_v2, 1 }
 0x204   : > { %v1340_v47 = vrot.slane %v1339_v54, 1 }
 0x205   : > { %v1309_v50 = vadd.f32 %v1307_v55, %v1297_v13  ;;  %v1353_v17 = vsel %vm1102_vm2, %v1351_v2, %v1352_v9  ;;  %v1490_v2 = vstv %s1820_s11 }
 0x206   : > { %v1375_v7 = vpop.permute.xlu1 %1374  ;;  %v1341_v11 = vsel %vm1089_vm11, %v1339_v54, %v1340_v47  ;;  %v1487_v54 = vstv %s1771_s12 }
 0x207   : > { %v1321_v6 = vadd.f32 %v1319_v59, %v1309_v50  ;;  %v1363_v8 = vpop.permute.xlu0 %1362  ;;  %v1376_v18 = vrot.slane %v1375_v7, 1  ;;  %v1491_v50 = vmul.f32 %v1490_v2, %v1489_v43 }
 0x208   : > { %v1364_v12 = vrot.slane %v1363_v8, 1 }
 0x209   : > { %v1329_v10 = vadd.f32 %v1328_v51, %v1321_v6  ;;  %v1377_v28 = vsel %vm1128_vm4, %v1375_v7, %v1376_v18  ;;  %v1488_v6 = vmul.f32 %v1487_v54, %v1486_v53 }
 0x20a   : > { %v1399_v14 = vpop.permute.xlu1 %1398  ;;  %v1365_v49 = vsel %vm1115_vm3, %v1363_v8, %v1364_v12 }
 0x20b   : > { %v1343_v15 = vadd.f32 %v1341_v11, %v1329_v10  ;;  %v1387_v16 = vpop.permute.xlu0 %1386  ;;  %v1400_v61 = vrot.slane %v1399_v14, 1  ;;  %v1492_v10 = vadd.f32 %v1491_v50, %v1488_v6 }
 0x20c   : > { %v1388_v19 = vrot.slane %v1387_v16, 1 }
 0x20d   : > { %v1355_v26 = vadd.f32 %v1353_v17, %v1343_v15  ;;  %v1401_v27 = vsel %vm1154_vm6, %v1399_v14, %v1400_v61 }
 0x20e   : > { %v1433_v20 = vpop.permute.xlu1 %1432  ;;  %v1389_v34 = vsel %vm1141_vm5, %v1387_v16, %v1388_v19 }
 0x20f   : > { %v1367_v22 = vadd.f32 %v1365_v49, %v1355_v26  ;;  %v1421_v24 = vpop.permute.xlu0 %1420  ;;  %v1434_v41 = vrot.slane %v1433_v20, 1 }
 0x210   : > { %v1422_v31 = vrot.slane %v1421_v24, 1 }
 0x211   : > { %v1379_v23 = vadd.f32 %v1377_v28, %v1367_v22  ;;  %v1435_v56 = vsel %vm1102_vm2, %v1433_v20, %v1434_v41  ;;  %v1571_v22 = vld [vmem:[#allocation17] sm:$0x3] }
 0x212   : > { %v1457_v0 = vpop.permute.xlu1 %1456  ;;  %v1423_v1 = vsel %vm1089_vm11, %v1421_v24, %v1422_v31  ;;  %v1572_v24 = vstv %s1821_s13 }
 0x213   : > { %v1391_v36 = vadd.f32 %v1389_v34, %v1379_v23  ;;  %v1445_v39 = vpop.permute.xlu0 %1444  ;;  %v1458_v32 = vrot.slane %v1457_v0, 1  ;;  %v1568_v23 = vld [vmem:[#allocation10] sm:$0x3] }
 0x214   : > { %v1446_v48 = vrot.slane %v1445_v39, 1 }
 0x215   : > { %v1403_v40 = vadd.f32 %v1401_v27, %v1391_v36  ;;  %v1459_v5 = vsel %vm1128_vm4, %v1457_v0, %v1458_v32  ;;  %v1573_v0 = vmul.f32 %v1572_v24, %v1571_v22 }
 0x216   : > { %v1481_v42 = vpop.permute.xlu1 %1480  ;;  %v1447_v44 = vsel %vm1115_vm3, %v1445_v39, %v1446_v48  ;;  %v1570_v39 = vmul.f32 %v1569_v33, %v1568_v23 }
 0x217   : > { %v1411_v45 = vadd.f32 %v1410_v3, %v1403_v40  ;;  %v1469_v46 = vpop.permute.xlu0 %1468  ;;  %v1482_v13 = vrot.slane %v1481_v42, 1 }
 0x218   : > { %v1470_v35 = vrot.slane %v1469_v46, 1  ;;  %v1574_v41 = vadd.f32 %v1573_v0, %v1570_v39 }
 0x219   : > { %v1425_v52 = vadd.f32 %v1423_v1, %v1411_v45  ;;  %v1483_v51 = vsel %vm1154_vm6, %v1481_v42, %v1482_v13 }
 0x21a   : > { %v1515_v60 = vpop.permute.xlu1 %1514  ;;  %v1471_v47 = vsel %vm1141_vm5, %v1469_v46, %v1470_v35 }
 0x21b   : > { %v1437_v62 = vadd.f32 %v1435_v56, %v1425_v52  ;;  %v1503_v63 = vpop.permute.xlu0 %1502  ;;  %v1516_v12 = vrot.slane %v1515_v60, 1 }
 0x21c   : > { %v1504_v8 = vrot.slane %v1503_v63, 1 }
 0x21d   : > { %v1449_v4 = vadd.f32 %v1447_v44, %v1437_v62  ;;  %v1517_v26 = vsel %vm1102_vm2, %v1515_v60, %v1516_v12 }
 0x21e   : > { %v1539_v30 = vpop.permute.xlu1 %1538  ;;  %v1505_v16 = vsel %vm1089_vm11, %v1503_v63, %v1504_v8 }
 0x21f   : > { %v1461_v55 = vadd.f32 %v1459_v5, %v1449_v4  ;;  %v1527_v59 = vpop.permute.xlu0 %1526  ;;  %v1540_v49 = vrot.slane %v1539_v30, 1 }
 0x220   : > { %v1528_v17 = vrot.slane %v1527_v59, 1 }
 0x221   : > { %v1473_v7 = vadd.f32 %v1471_v47, %v1461_v55  ;;  %v1541_v29 = vsel %vm1128_vm4, %v1539_v30, %v1540_v49  ;;  %v1651_v55 = vstv %s1650_s16 }
 0x222   : > { %v1563_v15 = vpop.permute.xlu1 %1562  ;;  %v1529_v37 = vsel %vm1115_vm3, %v1527_v59, %v1528_v17 }
 0x223   : > { %v1485_v9 = vadd.f32 %v1483_v51, %v1473_v7  ;;  %v1551_v11 = vpop.permute.xlu0 %1550  ;;  %v1564_v25 = vrot.slane %v1563_v15, 1 }
 0x224   : > { %v1552_v21 = vrot.slane %v1551_v11, 1 }
 0x225   : > { %v1493_v14 = vadd.f32 %v1492_v10, %v1485_v9  ;;  %v1565_v31 = vsel %vm1154_vm6, %v1563_v15, %v1564_v25  ;;  %v1659_v9 = vld [vmem:[%s2206_s8] sm:$0xff]  ;;  %s1985_s8 = sshll.u32 %s2068_s21, 4  ;;  %s1986_s8 = int_to_ptr.vmem [resolvable:$false] %s1985_s8 }
 0x226   : > { %v1597_v61 = vpop.permute.xlu1 %1596  ;;  %v1553_v36 = vsel %vm1141_vm5, %v1551_v11, %v1552_v21  ;;  %s1987_s14 = scalar_lea.vmem %s1986_s8, 256  ;;  %p1988_p12 = scmp.lt.s32.totalorder %s2891_s7, %s1986_s8 }
 0x227   : > { %v1507_v18 = vadd.f32 %v1505_v16, %v1493_v14  ;;  %v1585_v20 = vpop.permute.xlu0 %1584  ;;  %v1598_v45 = vrot.slane %v1597_v61, 1  ;;  %p1989_p1 = scmp.lt.s32.totalorder %s1987_s14, %s1981_s25 }
 0x228   : > { %v1586_v40 = vrot.slane %v1585_v20, 1 }
 0x229   : > { %v1519_v19 = vadd.f32 %v1517_v26, %v1507_v18  ;;  %v1599_v32 = vsel %vm1102_vm2, %v1597_v61, %v1598_v45  ;;  %p1990_p7 = por %p1989_p1, %p1988_p12 }
 0x22a   : > { %v1621_v42 = vpop.permute.xlu1 %1620  ;;  %v1587_v1 = vsel %vm1089_vm11, %v1585_v20, %v1586_v40 }
 0x22b   : > { %v1531_v28 = vadd.f32 %v1529_v37, %v1519_v19  ;;  %v1609_v27 = vpop.permute.xlu0 %1608  ;;  %v1622_v60 = vrot.slane %v1621_v42, 1  ;;  %p1991_p9 = pnand %p1990_p7, %p1984_p4 }
 0x22c   : > { %v1610_v48 = vrot.slane %v1609_v27, 1 }
 0x22d   : > { %v1543_v34 = vadd.f32 %v1541_v29, %v1531_v28  ;;  %v1623_v2 = vsel %vm1128_vm4, %v1621_v42, %v1622_v60 }
 0x22e   : > { %v1645_v63 = vpop.permute.xlu1 %1644  ;;  %v1611_v44 = vsel %vm1115_vm3, %v1609_v27, %v1610_v48 }
 0x22f   : > { %v1555_v38 = vadd.f32 %v1553_v36, %v1543_v34  ;;  %v1633_v56 = vpop.permute.xlu0 %1632  ;;  %v1646_v4 = vrot.slane %v1645_v63, 1 }
 0x230   : > { %v1634_v35 = vrot.slane %v1633_v56, 1 }
 0x231   : > { %v1567_v3 = vadd.f32 %v1565_v31, %v1555_v38  ;;  %v1647_v54 = vsel %vm1154_vm6, %v1645_v63, %v1646_v4 }
 0x232   : > { %v1635_v13 = vsel %vm1141_vm5, %v1633_v56, %v1634_v35 }
 0x233   : > { %v1575_v46 = vadd.f32 %v1574_v41, %v1567_v3 }
 0x235   : > { %v1589_v52 = vadd.f32 %v1587_v1, %v1575_v46 }
 0x237   : > { %v1601_v62 = vadd.f32 %v1599_v32, %v1589_v52 }
 0x239   : > { %v1613_v43 = vadd.f32 %v1611_v44, %v1601_v62 }
 0x23b   : > { %v1625_v5 = vadd.f32 %v1623_v2, %v1613_v43 }
 0x23d   : > { %v1637_v53 = vadd.f32 %v1635_v13, %v1625_v5 }
 0x23f   : > { %v1649_v50 = vadd.f32 %v1647_v54, %v1637_v53 }
 0x241   : > { %v1652_v30 = vadd.f32 %v1651_v55, %v1649_v50 }
 0x243   : > { %v1864_v59 = vmul.f32 -1.442695, %v1652_v30 }
 0x245   : > { %1935 = vpow2.f32 %v1864_v59 }
 0x24f   : > { %v1936_v47 = vpop.eup %1935 }
 0x250   : > { %v1656_v7 = vadd.f32 1.0, %v1936_v47 }
 0x252   : > { %1937 = vrcp.f32 %v1656_v7 }
 0x25c   : > { %v1938_v6 = vpop.eup %1937 }
 0x25d   : > { %v1664_v51 = vrot.slane %v1938_v6, %v2250_v57  ;;  %v1668_v8 = vrot.slane %v1938_v6, %v2252_v58 }
 0x25f   : > { %v1669_v10 = vcombine.low %v1664_v51, %v1668_v8 }
 0x261   : > { %v1671_v11 = vmul.f32 %v1669_v10, %v1659_v9 }
 0x263   : > { %1672 = vst [vmem:[%s141_s4] sm:$0xff] %v1671_v11 }
 0x264   : > { %1994 = shalt.err (!%p1991_p9)
}
 0x265   : > { %s1995_s5 = scalar_lea.hbm %s2889_s22, 128  ;;  %s1999_s20 = scalar_lea.hbm %s2936_s3, 256 }
 0x266   : > { %p1996_p10 = scmp.ne.s32.totalorder %s2889_s22, %s1995_s5  ;;  %p2000_p5 = scmp.lt.u32.totalorder %s2889_s22, %s2936_s3 }
 0x267   : > { %p2001_p6 = scmp.lt.u32.totalorder %s1999_s20, %s1995_s5  ;;  %p2003_p11 = scmp.lt.u32.totalorder %s1995_s5, %s2889_s22 }
 0x268   : > { %p1997_p13 = pnand %p1996_p10, %p2985_p2 }
 0x269   : > { %p2002_p8 = por %p2001_p6, %p2000_p5 }
 0x26a   : > { %p1998_p0 = pneg %p1997_p13 }
 0x26b   : > { %p2004_p3 = por %p2003_p11, %p2002_p8 }
 0x26d   : > { %p2005_p4 = pnand %p2004_p3, %p1998_p0 }
 0x26f   : > { %2008 = shalt.err (!%p2005_p4)
}
 0x270   : > { %1874 = dma.vmem_to_hbm [thread:$0]  (%p2985_p2), %s2891_s7, 128, %s2889_s22, %s1674_s24  }
 0x271 PF: > { %s2986_s19 = sld [smem:[#allocation33_spill]]  ;;  %s2987_s30 = sld [smem:[#allocation30_spill]] }
 0x272   : > { %s1700_s2 = sand.u32 1, %s2037_s0  }
 0x273   : > { %s1701_s26 = scalar_lea.sflag [#allocation23], %s1700_s2 }
 0x277   : > { %p2988_p12 = scmp.ne.s32.totalorder %s2986_s19, 0  ;;  %p2989_p1 = scmp.ge.s32.totalorder %s2987_s30, 2 }
 0x279   : > { %p1881_p7 = pnand %p2989_p1, %p2988_p12 }
 0x27b   : > { %2032 = dma.done.wait (!%p1881_p7), %s1701_s26, 128  }
 0x27c   : > { %2034 = vsyncadd (!%p1881_p7), %s1701_s26, 4294967168  ;;  %s2990_s20 = sld [smem:[#allocation31_spill]]  ;;  %s2991_s0 = sld [smem:[#allocation28_spill]] }
 0x27d   : > { %s2992_s1 = sld [smem:[#allocation29_spill]]  ;;  %s2993_s19 = sld [smem:[#allocation32_spill]] }
 0x282   : > { %p23_p9 = scmp.ge.s32.totalorder %s2990_s20, 4  }
 0x284   :  { %25 = sbr.rel (!%p23_p9) target bundleno = 21 (0x15), region = 69 }
 0x28b   :  { %1706 = vsyncpa [#allocation22], 1 }
 0x28c   :  { %1708 = vsyncpa [#allocation22 + $0x1], 1 }
 0x28d   :  { %1709 = vsyncpa [#allocation23], 1 }
 0x28e   :  { %1711 = vsyncpa [#allocation23 + $0x1], 1 }

</bundles_post_ra>
